<compile_context>
chip_gen: v6e
topology: v6e:2x2x1
jax: 0.10.0
libtpu: 0.0.40
codegen_flags: <defaults>
</compile_context>

<pallas_src>
import functools

import jax
import jax.numpy as jnp
from jax.experimental import pallas as pl
from jax.experimental.pallas import tpu as pltpu

MATMUL_DTYPE = jnp.bfloat16   # MXU operand dtype (accumulate / gate math in f32)
RECURRENCE_UNROLL = 8         # bounded unroll of the sequential time loop


def _round_up(n, m):
    return ((n + m - 1) // m) * m


# -----------------------------------------------------------------------------
# Fused kernel: 2 software-pipelined LSTM layers + bulk output Linear head.
# -----------------------------------------------------------------------------
def fused_lstm_kernel(x_ref, w_ih0_ref, w_hh0_ref, b0_ref,
                      w_l1_ref, b1_ref, w_out_ref, b_out_ref,
                      out_ref,
                      xg0_buf, h1_buf,
                      *, seq_len, batch_pad, hidden_pad, gate_width,
                      hidden_size, packed_gates, unroll):
    S, Bp, Hp, GW, H = seq_len, batch_pad, hidden_pad, gate_width, hidden_size
    f32 = jnp.float32
    mm_dtype = w_hh0_ref.dtype

    def row_of(t):
        r = t * Bp
        return r if isinstance(r, int) else pl.multiple_of(r, Bp)

    def cell(gates, c):
        # PyTorch gate order [i, f, g, o].
        if packed_gates:
            # All four H-wide gates share one 128-lane block: 2 EUP passes
            # (sigmoid + tanh over the packed vreg) and XLU rolls (free slot)
            # to align f/g/o with lanes [0, H) where h/c live.  Lanes >= H of
            # h/c hold bounded garbage, but every consuming weight matrix has
            # exactly-zero rows there, so it never leaks into real outputs.
            sig = jax.nn.sigmoid(gates)
            th = jnp.tanh(gates)
            i_g = sig
            f_g = pltpu.roll(sig, GW - 1 * H, axis=1)
            g_g = pltpu.roll(th, GW - 2 * H, axis=1)
            o_g = pltpu.roll(sig, GW - 3 * H, axis=1)
        else:
            # Lane-aligned 128-wide gate blocks (used when 4*H > 128).
            i_g = jax.nn.sigmoid(gates[:, 0 * Hp:1 * Hp])
            f_g = jax.nn.sigmoid(gates[:, 1 * Hp:2 * Hp])
            g_g = jnp.tanh(gates[:, 2 * Hp:3 * Hp])
            o_g = jax.nn.sigmoid(gates[:, 3 * Hp:4 * Hp])
        c_new = f_g * c + i_g * g_g
        h_new = o_g * jnp.tanh(c_new)
        return h_new, c_new

    def l0_step(t, h0, c0):
        # Input projection was precomputed in bulk; only h @ W_hh is serial.
        gates = (xg0_buf[pl.ds(row_of(t), Bp), :]
                 + jnp.dot(h0.astype(mm_dtype), w_hh0_ref[...],
                           preferred_element_type=f32))
        return cell(gates, c0)

    def l1_step(t, h0_t, h1, c1):
        # Input + recurrent projection fused into ONE K=2*Hp matmul.
        hcat = jnp.concatenate([h0_t, h1], axis=1).astype(mm_dtype)
        gates = (jnp.dot(hcat, w_l1_ref[...], preferred_element_type=f32)
                 + b1_ref[...])
        h1_new, c1_new = cell(gates, c1)
        h1_buf[pl.ds(row_of(t), Bp), :] = h1_new     # head input, stays in VMEM
        return h1_new, c1_new

    # ---- bulk layer-0 input projection: one big MXU-efficient matmul --------
    xg0_buf[...] = (jnp.dot(x_ref[...], w_ih0_ref[...],
                            preferred_element_type=f32) + b0_ref[...])

    # ---- skewed two-layer recurrence -----------------------------------------
    # Iteration t advances layer 0 to step t while layer 1 consumes h0_{t-1};
    # both only read the carried h0, so their MXU/EUP work can overlap.
    zeros = jnp.zeros((Bp, Hp), f32)
    h0, c0 = l0_step(0, zeros, zeros)                      # prologue: layer-0 step 0

    def skewed_step(t, carry):
        h0, c0, h1, c1 = carry
        h1_new, c1_new = l1_step(t - 1, h0, h1, c1)        # layer 1, step t-1
        h0_new, c0_new = l0_step(t, h0, c0)                # layer 0, step t
        return (h0_new, c0_new, h1_new, c1_new)

    h0, c0, h1, c1 = jax.lax.fori_loop(1, S, skewed_step,
                                       (h0, c0, zeros, zeros),
                                       unroll=unroll)
    l1_step(S - 1, h0, h1, c1)                             # epilogue: layer-1 step S-1

    # ---- fused Linear head: ONE bulk matmul + lane-dense store --------------
    out_ref[...] = (jnp.dot(h1_buf[...].astype(mm_dtype), w_out_ref[...],
                            preferred_element_type=f32) + b_out_ref[...])


# -----------------------------------------------------------------------------
# Wrapper
# -----------------------------------------------------------------------------
def lstm_forward(x, packed):
    """x: (S, B, I) f32 -> (S, B, output_size) f32 (matches the torch module)."""
    S, B, I = x.shape
    Bp, Ip, Hp, Op, GW = (packed["Bp"], packed["Ip"], packed["Hp"],
                          packed["Op"], packed["GW"])
    mm_dtype = packed["w_ih0"].dtype

    # Pad batch to 8 sublanes, features to 128 lanes; flatten time into the
    # sublane axis so the kernel works on a 2-D (S*Bp, Ip) slab.
    x_pad = jnp.zeros((S, Bp, Ip), mm_dtype).at[:, :B, :I].set(x.astype(mm_dtype))
    x2d = x_pad.reshape(S * Bp, Ip)

    kernel = functools.partial(
        fused_lstm_kernel, seq_len=S, batch_pad=Bp, hidden_pad=Hp,
        gate_width=GW, hidden_size=packed["H"],
        packed_gates=packed["packed_gates"],
        unroll=min(RECURRENCE_UNROLL, max(S - 1, 1)))

    # No grid: single invocation, whole arrays resident in VMEM with a single
    # buffer each (no pipeline double-buffering -> fits v7x's smaller VMEM).
    vmem = pltpu.MemorySpace.VMEM
    out2d = pl.pallas_call(
        kernel,
        out_shape=jax.ShapeDtypeStruct((S * Bp, Op), jnp.float32),
        in_specs=[pl.BlockSpec(memory_space=vmem) for _ in range(8)],
        out_specs=pl.BlockSpec(memory_space=vmem),
        scratch_shapes=[
            pltpu.VMEM((S * Bp, GW), jnp.float32),   # layer-0 input-gate preacts
            pltpu.VMEM((S * Bp, Hp), jnp.float32),   # layer-1 hidden sequence
        ],
        compiler_params=pltpu.CompilerParams(vmem_limit_bytes=32 * 1024 * 1024),
    )(x2d, packed["w_ih0"], packed["w_hh0"], packed["b0"],
      packed["w_l1"], packed["b1"], packed["w_out"], packed["b_out"])

    return out2d.reshape(S, Bp, Op)[:, :B, :packed["output_size"]]


# -----------------------------------------------------------------------------
# Parameters: raw torch-layout init + packing into padded, gate-blocked layout
# -----------------------------------------------------------------------------
def init_raw_params(key, input_size, hidden_size, num_layers, output_size):
    assert num_layers == 2, "kernel is fused for the module default num_layers=2"
    k = 1.0 / jnp.sqrt(hidden_size)
    layers = []
    for layer in range(num_layers):
        in_sz = input_size if layer == 0 else hidden_size
        key, k1, k2, k3, k4 = jax.random.split(key, 5)
        layers.append({
            "w_ih": jax.random.uniform(k1, (4 * hidden_size, in_sz), jnp.float32, -k, k),
            "w_hh": jax.random.uniform(k2, (4 * hidden_size, hidden_size), jnp.float32, -k, k),
            "b_ih": jax.random.uniform(k3, (4 * hidden_size,), jnp.float32, -k, k),
            "b_hh": jax.random.uniform(k4, (4 * hidden_size,), jnp.float32, -k, k),
        })
    key, k5, k6 = jax.random.split(key, 3)
    ko = 1.0 / jnp.sqrt(hidden_size)
    out_w = jax.random.uniform(k5, (output_size, hidden_size), jnp.float32, -ko, ko)
    out_b = jax.random.uniform(k6, (output_size,), jnp.float32, -ko, ko)
    return {"lstm": layers, "out_w": out_w, "out_b": out_b}


def pack_params(raw, input_size, hidden_size, output_size, batch,
                mm_dtype=MATMUL_DTYPE):
    H = hidden_size
    Hp = _round_up(H, 128)
    Ip = _round_up(input_size, 128)
    Op = _round_up(output_size, 128)
    Bp = _round_up(max(batch, 8), 8)
    packed_gates = 4 * H <= 128            # H <= 32: all 4 gates in one lane block
    GW = 128 if packed_gates else 4 * Hp

    def gate_w(w, in_dim, in_pad):
        # torch layout (4H, in_dim), gate order [i, f, g, o].
        if packed_gates:
            # gate j occupies lanes [j*H, (j+1)*H) of a single 128-lane block.
            full = jnp.zeros((in_pad, GW), jnp.float32).at[:in_dim, :4 * H].set(w.T)
        else:
            # gate j occupies its own lane-aligned 128-wide block.
            w4 = w.reshape(4, H, in_dim)
            full = (jnp.zeros((4, Hp, in_pad), jnp.float32)
                    .at[:, :H, :in_dim].set(w4)
                    .transpose(2, 0, 1).reshape(in_pad, GW))
        return full.astype(mm_dtype)       # bf16 cast keeps zero padding exact

    def gate_b(b_ih, b_hh):
        b = b_ih + b_hh
        if packed_gates:
            return jnp.zeros((1, GW), jnp.float32).at[0, :4 * H].set(b)
        b4 = b.reshape(4, H)
        return jnp.zeros((4, Hp), jnp.float32).at[:, :H].set(b4).reshape(1, GW)

    l0, l1 = raw["lstm"]
    return {
        "w_ih0": gate_w(l0["w_ih"], input_size, Ip),
        "w_hh0": gate_w(l0["w_hh"], H, Hp),
        "b0": gate_b(l0["b_ih"], l0["b_hh"]),
        # layer-1 input + recurrent weights stacked: one (Bp,2Hp)@(2Hp,GW)/step
        "w_l1": jnp.concatenate([gate_w(l1["w_ih"], H, Hp),
                                 gate_w(l1["w_hh"], H, Hp)], axis=0),
        "b1": gate_b(l1["b_ih"], l1["b_hh"]),
        "w_out": (jnp.zeros((Hp, Op), jnp.float32)
                  .at[:H, :output_size].set(raw["out_w"].T).astype(mm_dtype)),
        "b_out": jnp.zeros((1, Op), jnp.float32).at[0, :output_size].set(raw["out_b"]),
        "Bp": Bp, "Ip": Ip, "Hp": Hp, "Op": Op, "GW": GW, "H": H,
        "packed_gates": packed_gates, "output_size": output_size,
    }


# -----------------------------------------------------------------------------
# Pure-JAX f32 reference (for correctness check), torch-layout weights
# -----------------------------------------------------------------------------
def lstm_model_ref(x, raw):
    S, B, _ = x.shape
    h_seq = x
    for lp in raw["lstm"]:
        H = lp["w_hh"].shape[1]
        w_ih_t, w_hh_t = lp["w_ih"].T, lp["w_hh"].T
        b = (lp["b_ih"] + lp["b_hh"]).reshape(1, -1)

        def step(carry, x_t, w_ih_t=w_ih_t, w_hh_t=w_hh_t, b=b, H=H):
            h, c = carry
            gates = x_t @ w_ih_t + h @ w_hh_t + b
            i = jax.nn.sigmoid(gates[:, 0 * H:1 * H])
            f = jax.nn.sigmoid(gates[:, 1 * H:2 * H])
            g = jnp.tanh(gates[:, 2 * H:3 * H])
            o = jax.nn.sigmoid(gates[:, 3 * H:4 * H])
            c = f * c + i * g
            h = o * jnp.tanh(c)
            return (h, c), h

        init = (jnp.zeros((B, H), jnp.float32), jnp.zeros((B, H), jnp.float32))
        _, h_seq = jax.lax.scan(step, init, h_seq)
    out = h_seq.reshape(S * B, -1) @ raw["out_w"].T + raw["out_b"]
    return out.reshape(S, B, -1)


if __name__ == "__main__":
    SEQ, BATCH = 8, 2
    INPUT_SIZE, HIDDEN_SIZE, NUM_LAYERS, OUTPUT_SIZE = 16, 32, 2, 1

    key = jax.random.PRNGKey(0)
    key, kx = jax.random.split(key)
    x = jax.random.normal(kx, (SEQ, BATCH, INPUT_SIZE), jnp.float32)

    raw = init_raw_params(key, INPUT_SIZE, HIDDEN_SIZE, NUM_LAYERS, OUTPUT_SIZE)
    packed = pack_params(raw, INPUT_SIZE, HIDDEN_SIZE, OUTPUT_SIZE, BATCH)

    out = lstm_forward(x, packed)
    out = jax.block_until_ready(out)

    ref = lstm_model_ref(x, raw)
    assert out.shape == (SEQ, BATCH, OUTPUT_SIZE)
    # bf16 MXU operands (f32 accumulation / gate math) -> looser tolerance
    # versus the pure-f32 reference.
    assert jnp.allclose(out, ref, rtol=3e-2, atol=3e-2), (
        float(jnp.max(jnp.abs(out - ref))))

    print("KERNEL_OK")
</pallas_src>

<mosaic_0001>
module attributes {stable_mosaic.version = 11 : i64} {
  func.func @fused_lstm_kernel(%arg0: memref<64x128xbf16, #tpu.memory_space<vmem>>, %arg1: memref<128x128xbf16, #tpu.memory_space<vmem>>, %arg2: memref<128x128xbf16, #tpu.memory_space<vmem>>, %arg3: memref<1x128xf32, #tpu.memory_space<vmem>>, %arg4: memref<256x128xbf16, #tpu.memory_space<vmem>>, %arg5: memref<1x128xf32, #tpu.memory_space<vmem>>, %arg6: memref<128x128xbf16, #tpu.memory_space<vmem>>, %arg7: memref<1x128xf32, #tpu.memory_space<vmem>>, %arg8: memref<64x128xf32, #tpu.memory_space<vmem>>, %arg9: memref<64x128xf32, #tpu.memory_space<vmem>>, %arg10: memref<64x128xf32, #tpu.memory_space<vmem>>) attributes {dimension_semantics = [], scalar_prefetch = 0 : i64, scratch_operands = 2 : i64, tpu.core_type = #tpu.core_type<tc>} {
    %c0 = arith.constant 0 : index
    %c0_0 = arith.constant 0 : index
    %0 = vector.load %arg0[%c0, %c0_0] : memref<64x128xbf16, #tpu.memory_space<vmem>>, vector<64x128xbf16>
    %c0_1 = arith.constant 0 : index
    %c0_2 = arith.constant 0 : index
    %1 = vector.load %arg1[%c0_1, %c0_2] : memref<128x128xbf16, #tpu.memory_space<vmem>>, vector<128x128xbf16>
    %cst = arith.constant dense<0.000000e+00> : vector<64x128xf32>
    %2 = tpu.matmul %0, %1, %cst {dimension_numbers = #tpu.dot_dimension_numbers<[1], [0], [0], [1], [0, 0, 1, 1], [], []>} : vector<64x128xbf16>, vector<128x128xbf16>, vector<64x128xf32> -> vector<64x128xf32>
    %c0_3 = arith.constant 0 : index
    %c0_4 = arith.constant 0 : index
    %3 = vector.load %arg3[%c0_3, %c0_4] : memref<1x128xf32, #tpu.memory_space<vmem>>, vector<1x128xf32>
    %4 = vector.broadcast %3 : vector<1x128xf32> to vector<64x128xf32>
    %5 = arith.addf %2, %4 : vector<64x128xf32>
    %c0_5 = arith.constant 0 : index
    %c0_6 = arith.constant 0 : index
    %6 = vector.load %arg9[%c0_5, %c0_6] : memref<64x128xf32, #tpu.memory_space<vmem>>, vector<64x128xf32>
    tpu.vector_store %arg9[%c0_5, %c0_6], %5 {strides = array<i32>} : memref<64x128xf32, #tpu.memory_space<vmem>>, vector<64x128xf32>,
    %cst_7 = arith.constant 0.000000e+00 : f32
    %7 = vector.broadcast %cst_7 : f32 to vector<8x128xf32>
    %c0_8 = arith.constant 0 : index
    %c0_9 = arith.constant 0 : index
    %8 = vector.load %arg9[%c0_8, %c0_9] : memref<64x128xf32, #tpu.memory_space<vmem>>, vector<8x128xf32>
    %9 = arith.truncf %7 : vector<8x128xf32> to vector<8x128xbf16>
    %c0_10 = arith.constant 0 : index
    %c0_11 = arith.constant 0 : index
    %10 = vector.load %arg2[%c0_10, %c0_11] : memref<128x128xbf16, #tpu.memory_space<vmem>>, vector<128x128xbf16>
    %cst_12 = arith.constant dense<0.000000e+00> : vector<8x128xf32>
    %11 = tpu.matmul %9, %10, %cst_12 {dimension_numbers = #tpu.dot_dimension_numbers<[1], [0], [0], [1], [0, 0, 1, 1], [], []>} : vector<8x128xbf16>, vector<128x128xbf16>, vector<8x128xf32> -> vector<8x128xf32>
    %12 = arith.addf %8, %11 : vector<8x128xf32>
    %13 = arith.negf %12 : vector<8x128xf32>
    %14 = math.exp %13 : vector<8x128xf32>
    %cst_13 = arith.constant 1.000000e+00 : f32
    %15 = vector.broadcast %cst_13 : f32 to vector<8x128xf32>
    %16 = arith.addf %15, %14 : vector<8x128xf32>
    %17 = arith.divf %15, %16 : vector<8x128xf32>
    %18 = math.tanh %12 : vector<8x128xf32>
    %c96_i32 = arith.constant 96 : i32
    %19 = tpu.dynamic_rotate %17 by %c96_i32 dim 1 : vector<8x128xf32>, i32 -> vector<8x128xf32>
    %c64_i32 = arith.constant 64 : i32
    %20 = tpu.dynamic_rotate %18 by %c64_i32 dim 1 : vector<8x128xf32>, i32 -> vector<8x128xf32>
    %c32_i32 = arith.constant 32 : i32
    %21 = tpu.dynamic_rotate %17 by %c32_i32 dim 1 : vector<8x128xf32>, i32 -> vector<8x128xf32>
    %22 = arith.mulf %19, %7 : vector<8x128xf32>
    %23 = arith.mulf %17, %20 : vector<8x128xf32>
    %24 = arith.addf %22, %23 : vector<8x128xf32>
    %25 = math.tanh %24 : vector<8x128xf32>
    %26 = arith.mulf %21, %25 : vector<8x128xf32>
    %c1_i32 = arith.constant 1 : i32
    %c1_i32_14 = arith.constant 1 : i32
    %27 = arith.subi %c1_i32, %c1_i32_14 : i32
    %28 = tpu.concatenate %26, %7 in 1 : vector<8x128xf32>, vector<8x128xf32> -> vector<8x256xf32>
    %29 = arith.truncf %28 : vector<8x256xf32> to vector<8x256xbf16>
    %c0_15 = arith.constant 0 : index
    %c0_16 = arith.constant 0 : index
    %30 = vector.load %arg4[%c0_15, %c0_16] : memref<256x128xbf16, #tpu.memory_space<vmem>>, vector<256x128xbf16>
    %cst_17 = arith.constant dense<0.000000e+00> : vector<8x128xf32>
    %31 = tpu.matmul %29, %30, %cst_17 {dimension_numbers = #tpu.dot_dimension_numbers<[1], [0], [0], [1], [0, 0, 1, 1], [], []>} : vector<8x256xbf16>, vector<256x128xbf16>, vector<8x128xf32> -> vector<8x128xf32>
    %c0_18 = arith.constant 0 : index
    %c0_19 = arith.constant 0 : index
    %32 = vector.load %arg5[%c0_18, %c0_19] : memref<1x128xf32, #tpu.memory_space<vmem>>, vector<1x128xf32>
    %33 = vector.broadcast %32 : vector<1x128xf32> to vector<8x128xf32>
    %34 = arith.addf %31, %33 : vector<8x128xf32>
    %35 = arith.negf %34 : vector<8x128xf32>
    %36 = math.exp %35 : vector<8x128xf32>
    %cst_20 = arith.constant 1.000000e+00 : f32
    %37 = vector.broadcast %cst_20 : f32 to vector<8x128xf32>
    %38 = arith.addf %37, %36 : vector<8x128xf32>
    %39 = arith.divf %37, %38 : vector<8x128xf32>
    %40 = math.tanh %34 : vector<8x128xf32>
    %c96_i32_21 = arith.constant 96 : i32
    %41 = tpu.dynamic_rotate %39 by %c96_i32_21 dim 1 : vector<8x128xf32>, i32 -> vector<8x128xf32>
    %c64_i32_22 = arith.constant 64 : i32
    %42 = tpu.dynamic_rotate %40 by %c64_i32_22 dim 1 : vector<8x128xf32>, i32 -> vector<8x128xf32>
    %c32_i32_23 = arith.constant 32 : i32
    %43 = tpu.dynamic_rotate %39 by %c32_i32_23 dim 1 : vector<8x128xf32>, i32 -> vector<8x128xf32>
    %44 = arith.mulf %41, %7 : vector<8x128xf32>
    %45 = arith.mulf %39, %42 : vector<8x128xf32>
    %46 = arith.addf %44, %45 : vector<8x128xf32>
    %47 = math.tanh %46 : vector<8x128xf32>
    %48 = arith.mulf %43, %47 : vector<8x128xf32>
    %c8_i32 = arith.constant 8 : i32
    %49 = arith.muli %27, %c8_i32 : i32
    %50 = tpu.assume_multiple %49, 8 : i32
    %51 = arith.index_cast %50 : i32 to index
    %c0_24 = arith.constant 0 : index
    %52 = vector.load %arg10[%51, %c0_24] : memref<64x128xf32, #tpu.memory_space<vmem>>, vector<8x128xf32>
    tpu.vector_store %arg10[%51, %c0_24], %48 {strides = array<i32>} : memref<64x128xf32, #tpu.memory_space<vmem>>, vector<8x128xf32>,
    %c8_i32_25 = arith.constant 8 : i32
    %53 = arith.muli %c1_i32, %c8_i32_25 : i32
    %54 = tpu.assume_multiple %53, 8 : i32
    %55 = arith.index_cast %54 : i32 to index
    %c0_26 = arith.constant 0 : index
    %56 = vector.load %arg9[%55, %c0_26] : memref<64x128xf32, #tpu.memory_space<vmem>>, vector<8x128xf32>
    %57 = arith.truncf %26 : vector<8x128xf32> to vector<8x128xbf16>
    %c0_27 = arith.constant 0 : index
    %c0_28 = arith.constant 0 : index
    %58 = vector.load %arg2[%c0_27, %c0_28] : memref<128x128xbf16, #tpu.memory_space<vmem>>, vector<128x128xbf16>
    %cst_29 = arith.constant dense<0.000000e+00> : vector<8x128xf32>
    %59 = tpu.matmul %57, %58, %cst_29 {dimension_numbers = #tpu.dot_dimension_numbers<[1], [0], [0], [1], [0, 0, 1, 1], [], []>} : vector<8x128xbf16>, vector<128x128xbf16>, vector<8x128xf32> -> vector<8x128xf32>
    %60 = arith.addf %56, %59 : vector<8x128xf32>
    %61 = arith.negf %60 : vector<8x128xf32>
    %62 = math.exp %61 : vector<8x128xf32>
    %cst_30 = arith.constant 1.000000e+00 : f32
    %63 = vector.broadcast %cst_30 : f32 to vector<8x128xf32>
    %64 = arith.addf %63, %62 : vector<8x128xf32>
    %65 = arith.divf %63, %64 : vector<8x128xf32>
    %66 = math.tanh %60 : vector<8x128xf32>
    %c96_i32_31 = arith.constant 96 : i32
    %67 = tpu.dynamic_rotate %65 by %c96_i32_31 dim 1 : vector<8x128xf32>, i32 -> vector<8x128xf32>
    %c64_i32_32 = arith.constant 64 : i32
    %68 = tpu.dynamic_rotate %66 by %c64_i32_32 dim 1 : vector<8x128xf32>, i32 -> vector<8x128xf32>
    %c32_i32_33 = arith.constant 32 : i32
    %69 = tpu.dynamic_rotate %65 by %c32_i32_33 dim 1 : vector<8x128xf32>, i32 -> vector<8x128xf32>
    %70 = arith.mulf %67, %24 : vector<8x128xf32>
    %71 = arith.mulf %65, %68 : vector<8x128xf32>
    %72 = arith.addf %70, %71 : vector<8x128xf32>
    %73 = math.tanh %72 : vector<8x128xf32>
    %74 = arith.mulf %69, %73 : vector<8x128xf32>
    %c2_i32 = arith.constant 2 : i32
    %c1_i32_34 = arith.constant 1 : i32
    %75 = arith.subi %c2_i32, %c1_i32_34 : i32
    %76 = tpu.concatenate %74, %48 in 1 : vector<8x128xf32>, vector<8x128xf32> -> vector<8x256xf32>
    %77 = arith.truncf %76 : vector<8x256xf32> to vector<8x256xbf16>
    %c0_35 = arith.constant 0 : index
    %c0_36 = arith.constant 0 : index
    %78 = vector.load %arg4[%c0_35, %c0_36] : memref<256x128xbf16, #tpu.memory_space<vmem>>, vector<256x128xbf16>
    %cst_37 = arith.constant dense<0.000000e+00> : vector<8x128xf32>
    %79 = tpu.matmul %77, %78, %cst_37 {dimension_numbers = #tpu.dot_dimension_numbers<[1], [0], [0], [1], [0, 0, 1, 1], [], []>} : vector<8x256xbf16>, vector<256x128xbf16>, vector<8x128xf32> -> vector<8x128xf32>
    %c0_38 = arith.constant 0 : index
    %c0_39 = arith.constant 0 : index
    %80 = vector.load %arg5[%c0_38, %c0_39] : memref<1x128xf32, #tpu.memory_space<vmem>>, vector<1x128xf32>
    %81 = vector.broadcast %80 : vector<1x128xf32> to vector<8x128xf32>
    %82 = arith.addf %79, %81 : vector<8x128xf32>
    %83 = arith.negf %82 : vector<8x128xf32>
    %84 = math.exp %83 : vector<8x128xf32>
    %cst_40 = arith.constant 1.000000e+00 : f32
    %85 = vector.broadcast %cst_40 : f32 to vector<8x128xf32>
    %86 = arith.addf %85, %84 : vector<8x128xf32>
    %87 = arith.divf %85, %86 : vector<8x128xf32>
    %88 = math.tanh %82 : vector<8x128xf32>
    %c96_i32_41 = arith.constant 96 : i32
    %89 = tpu.dynamic_rotate %87 by %c96_i32_41 dim 1 : vector<8x128xf32>, i32 -> vector<8x128xf32>
    %c64_i32_42 = arith.constant 64 : i32
    %90 = tpu.dynamic_rotate %88 by %c64_i32_42 dim 1 : vector<8x128xf32>, i32 -> vector<8x128xf32>
    %c32_i32_43 = arith.constant 32 : i32
    %91 = tpu.dynamic_rotate %87 by %c32_i32_43 dim 1 : vector<8x128xf32>, i32 -> vector<8x128xf32>
    %92 = arith.mulf %89, %46 : vector<8x128xf32>
    %93 = arith.mulf %87, %90 : vector<8x128xf32>
    %94 = arith.addf %92, %93 : vector<8x128xf32>
    %95 = math.tanh %94 : vector<8x128xf32>
    %96 = arith.mulf %91, %95 : vector<8x128xf32>
    %c8_i32_44 = arith.constant 8 : i32
    %97 = arith.muli %75, %c8_i32_44 : i32
    %98 = tpu.assume_multiple %97, 8 : i32
    %99 = arith.index_cast %98 : i32 to index
    %c0_45 = arith.constant 0 : index
    %100 = vector.load %arg10[%99, %c0_45] : memref<64x128xf32, #tpu.memory_space<vmem>>, vector<8x128xf32>
    tpu.vector_store %arg10[%99, %c0_45], %96 {strides = array<i32>} : memref<64x128xf32, #tpu.memory_space<vmem>>, vector<8x128xf32>,
    %c8_i32_46 = arith.constant 8 : i32
    %101 = arith.muli %c2_i32, %c8_i32_46 : i32
    %102 = tpu.assume_multiple %101, 8 : i32
    %103 = arith.index_cast %102 : i32 to index
    %c0_47 = arith.constant 0 : index
    %104 = vector.load %arg9[%103, %c0_47] : memref<64x128xf32, #tpu.memory_space<vmem>>, vector<8x128xf32>
    %105 = arith.truncf %74 : vector<8x128xf32> to vector<8x128xbf16>
    %c0_48 = arith.constant 0 : index
    %c0_49 = arith.constant 0 : index
    %106 = vector.load %arg2[%c0_48, %c0_49] : memref<128x128xbf16, #tpu.memory_space<vmem>>, vector<128x128xbf16>
    %cst_50 = arith.constant dense<0.000000e+00> : vector<8x128xf32>
    %107 = tpu.matmul %105, %106, %cst_50 {dimension_numbers = #tpu.dot_dimension_numbers<[1], [0], [0], [1], [0, 0, 1, 1], [], []>} : vector<8x128xbf16>, vector<128x128xbf16>, vector<8x128xf32> -> vector<8x128xf32>
    %108 = arith.addf %104, %107 : vector<8x128xf32>
    %109 = arith.negf %108 : vector<8x128xf32>
    %110 = math.exp %109 : vector<8x128xf32>
    %cst_51 = arith.constant 1.000000e+00 : f32
    %111 = vector.broadcast %cst_51 : f32 to vector<8x128xf32>
    %112 = arith.addf %111, %110 : vector<8x128xf32>
    %113 = arith.divf %111, %112 : vector<8x128xf32>
    %114 = math.tanh %108 : vector<8x128xf32>
    %c96_i32_52 = arith.constant 96 : i32
    %115 = tpu.dynamic_rotate %113 by %c96_i32_52 dim 1 : vector<8x128xf32>, i32 -> vector<8x128xf32>
    %c64_i32_53 = arith.constant 64 : i32
    %116 = tpu.dynamic_rotate %114 by %c64_i32_53 dim 1 : vector<8x128xf32>, i32 -> vector<8x128xf32>
    %c32_i32_54 = arith.constant 32 : i32
    %117 = tpu.dynamic_rotate %113 by %c32_i32_54 dim 1 : vector<8x128xf32>, i32 -> vector<8x128xf32>
    %118 = arith.mulf %115, %72 : vector<8x128xf32>
    %119 = arith.mulf %113, %116 : vector<8x128xf32>
    %120 = arith.addf %118, %119 : vector<8x128xf32>
    %121 = math.tanh %120 : vector<8x128xf32>
    %122 = arith.mulf %117, %121 : vector<8x128xf32>
    %c3_i32 = arith.constant 3 : i32
    %c1_i32_55 = arith.constant 1 : i32
    %123 = arith.subi %c3_i32, %c1_i32_55 : i32
    %124 = tpu.concatenate %122, %96 in 1 : vector<8x128xf32>, vector<8x128xf32> -> vector<8x256xf32>
    %125 = arith.truncf %124 : vector<8x256xf32> to vector<8x256xbf16>
    %c0_56 = arith.constant 0 : index
    %c0_57 = arith.constant 0 : index
    %126 = vector.load %arg4[%c0_56, %c0_57] : memref<256x128xbf16, #tpu.memory_space<vmem>>, vector<256x128xbf16>
    %cst_58 = arith.constant dense<0.000000e+00> : vector<8x128xf32>
    %127 = tpu.matmul %125, %126, %cst_58 {dimension_numbers = #tpu.dot_dimension_numbers<[1], [0], [0], [1], [0, 0, 1, 1], [], []>} : vector<8x256xbf16>, vector<256x128xbf16>, vector<8x128xf32> -> vector<8x128xf32>
    %c0_59 = arith.constant 0 : index
    %c0_60 = arith.constant 0 : index
    %128 = vector.load %arg5[%c0_59, %c0_60] : memref<1x128xf32, #tpu.memory_space<vmem>>, vector<1x128xf32>
    %129 = vector.broadcast %128 : vector<1x128xf32> to vector<8x128xf32>
    %130 = arith.addf %127, %129 : vector<8x128xf32>
    %131 = arith.negf %130 : vector<8x128xf32>
    %132 = math.exp %131 : vector<8x128xf32>
    %cst_61 = arith.constant 1.000000e+00 : f32
    %133 = vector.broadcast %cst_61 : f32 to vector<8x128xf32>
    %134 = arith.addf %133, %132 : vector<8x128xf32>
    %135 = arith.divf %133, %134 : vector<8x128xf32>
    %136 = math.tanh %130 : vector<8x128xf32>
    %c96_i32_62 = arith.constant 96 : i32
    %137 = tpu.dynamic_rotate %135 by %c96_i32_62 dim 1 : vector<8x128xf32>, i32 -> vector<8x128xf32>
    %c64_i32_63 = arith.constant 64 : i32
    %138 = tpu.dynamic_rotate %136 by %c64_i32_63 dim 1 : vector<8x128xf32>, i32 -> vector<8x128xf32>
    %c32_i32_64 = arith.constant 32 : i32
    %139 = tpu.dynamic_rotate %135 by %c32_i32_64 dim 1 : vector<8x128xf32>, i32 -> vector<8x128xf32>
    %140 = arith.mulf %137, %94 : vector<8x128xf32>
    %141 = arith.mulf %135, %138 : vector<8x128xf32>
    %142 = arith.addf %140, %141 : vector<8x128xf32>
    %143 = math.tanh %142 : vector<8x128xf32>
    %144 = arith.mulf %139, %143 : vector<8x128xf32>
    %c8_i32_65 = arith.constant 8 : i32
    %145 = arith.muli %123, %c8_i32_65 : i32
    %146 = tpu.assume_multiple %145, 8 : i32
    %147 = arith.index_cast %146 : i32 to index
    %c0_66 = arith.constant 0 : index
    %148 = vector.load %arg10[%147, %c0_66] : memref<64x128xf32, #tpu.memory_space<vmem>>, vector<8x128xf32>
    tpu.vector_store %arg10[%147, %c0_66], %144 {strides = array<i32>} : memref<64x128xf32, #tpu.memory_space<vmem>>, vector<8x128xf32>,
    %c8_i32_67 = arith.constant 8 : i32
    %149 = arith.muli %c3_i32, %c8_i32_67 : i32
    %150 = tpu.assume_multiple %149, 8 : i32
    %151 = arith.index_cast %150 : i32 to index
    %c0_68 = arith.constant 0 : index
    %152 = vector.load %arg9[%151, %c0_68] : memref<64x128xf32, #tpu.memory_space<vmem>>, vector<8x128xf32>
    %153 = arith.truncf %122 : vector<8x128xf32> to vector<8x128xbf16>
    %c0_69 = arith.constant 0 : index
    %c0_70 = arith.constant 0 : index
    %154 = vector.load %arg2[%c0_69, %c0_70] : memref<128x128xbf16, #tpu.memory_space<vmem>>, vector<128x128xbf16>
    %cst_71 = arith.constant dense<0.000000e+00> : vector<8x128xf32>
    %155 = tpu.matmul %153, %154, %cst_71 {dimension_numbers = #tpu.dot_dimension_numbers<[1], [0], [0], [1], [0, 0, 1, 1], [], []>} : vector<8x128xbf16>, vector<128x128xbf16>, vector<8x128xf32> -> vector<8x128xf32>
    %156 = arith.addf %152, %155 : vector<8x128xf32>
    %157 = arith.negf %156 : vector<8x128xf32>
    %158 = math.exp %157 : vector<8x128xf32>
    %cst_72 = arith.constant 1.000000e+00 : f32
    %159 = vector.broadcast %cst_72 : f32 to vector<8x128xf32>
    %160 = arith.addf %159, %158 : vector<8x128xf32>
    %161 = arith.divf %159, %160 : vector<8x128xf32>
    %162 = math.tanh %156 : vector<8x128xf32>
    %c96_i32_73 = arith.constant 96 : i32
    %163 = tpu.dynamic_rotate %161 by %c96_i32_73 dim 1 : vector<8x128xf32>, i32 -> vector<8x128xf32>
    %c64_i32_74 = arith.constant 64 : i32
    %164 = tpu.dynamic_rotate %162 by %c64_i32_74 dim 1 : vector<8x128xf32>, i32 -> vector<8x128xf32>
    %c32_i32_75 = arith.constant 32 : i32
    %165 = tpu.dynamic_rotate %161 by %c32_i32_75 dim 1 : vector<8x128xf32>, i32 -> vector<8x128xf32>
    %166 = arith.mulf %163, %120 : vector<8x128xf32>
    %167 = arith.mulf %161, %164 : vector<8x128xf32>
    %168 = arith.addf %166, %167 : vector<8x128xf32>
    %169 = math.tanh %168 : vector<8x128xf32>
    %170 = arith.mulf %165, %169 : vector<8x128xf32>
    %c4_i32 = arith.constant 4 : i32
    %c1_i32_76 = arith.constant 1 : i32
    %171 = arith.subi %c4_i32, %c1_i32_76 : i32
    %172 = tpu.concatenate %170, %144 in 1 : vector<8x128xf32>, vector<8x128xf32> -> vector<8x256xf32>
    %173 = arith.truncf %172 : vector<8x256xf32> to vector<8x256xbf16>
    %c0_77 = arith.constant 0 : index
    %c0_78 = arith.constant 0 : index
    %174 = vector.load %arg4[%c0_77, %c0_78] : memref<256x128xbf16, #tpu.memory_space<vmem>>, vector<256x128xbf16>
    %cst_79 = arith.constant dense<0.000000e+00> : vector<8x128xf32>
    %175 = tpu.matmul %173, %174, %cst_79 {dimension_numbers = #tpu.dot_dimension_numbers<[1], [0], [0], [1], [0, 0, 1, 1], [], []>} : vector<8x256xbf16>, vector<256x128xbf16>, vector<8x128xf32> -> vector<8x128xf32>
    %c0_80 = arith.constant 0 : index
    %c0_81 = arith.constant 0 : index
    %176 = vector.load %arg5[%c0_80, %c0_81] : memref<1x128xf32, #tpu.memory_space<vmem>>, vector<1x128xf32>
    %177 = vector.broadcast %176 : vector<1x128xf32> to vector<8x128xf32>
    %178 = arith.addf %175, %177 : vector<8x128xf32>
    %179 = arith.negf %178 : vector<8x128xf32>
    %180 = math.exp %179 : vector<8x128xf32>
    %cst_82 = arith.constant 1.000000e+00 : f32
    %181 = vector.broadcast %cst_82 : f32 to vector<8x128xf32>
    %182 = arith.addf %181, %180 : vector<8x128xf32>
    %183 = arith.divf %181, %182 : vector<8x128xf32>
    %184 = math.tanh %178 : vector<8x128xf32>
    %c96_i32_83 = arith.constant 96 : i32
    %185 = tpu.dynamic_rotate %183 by %c96_i32_83 dim 1 : vector<8x128xf32>, i32 -> vector<8x128xf32>
    %c64_i32_84 = arith.constant 64 : i32
    %186 = tpu.dynamic_rotate %184 by %c64_i32_84 dim 1 : vector<8x128xf32>, i32 -> vector<8x128xf32>
    %c32_i32_85 = arith.constant 32 : i32
    %187 = tpu.dynamic_rotate %183 by %c32_i32_85 dim 1 : vector<8x128xf32>, i32 -> vector<8x128xf32>
    %188 = arith.mulf %185, %142 : vector<8x128xf32>
    %189 = arith.mulf %183, %186 : vector<8x128xf32>
    %190 = arith.addf %188, %189 : vector<8x128xf32>
    %191 = math.tanh %190 : vector<8x128xf32>
    %192 = arith.mulf %187, %191 : vector<8x128xf32>
    %c8_i32_86 = arith.constant 8 : i32
    %193 = arith.muli %171, %c8_i32_86 : i32
    %194 = tpu.assume_multiple %193, 8 : i32
    %195 = arith.index_cast %194 : i32 to index
    %c0_87 = arith.constant 0 : index
    %196 = vector.load %arg10[%195, %c0_87] : memref<64x128xf32, #tpu.memory_space<vmem>>, vector<8x128xf32>
    tpu.vector_store %arg10[%195, %c0_87], %192 {strides = array<i32>} : memref<64x128xf32, #tpu.memory_space<vmem>>, vector<8x128xf32>,
    %c8_i32_88 = arith.constant 8 : i32
    %197 = arith.muli %c4_i32, %c8_i32_88 : i32
    %198 = tpu.assume_multiple %197, 8 : i32
    %199 = arith.index_cast %198 : i32 to index
    %c0_89 = arith.constant 0 : index
    %200 = vector.load %arg9[%199, %c0_89] : memref<64x128xf32, #tpu.memory_space<vmem>>, vector<8x128xf32>
    %201 = arith.truncf %170 : vector<8x128xf32> to vector<8x128xbf16>
    %c0_90 = arith.constant 0 : index
    %c0_91 = arith.constant 0 : index
    %202 = vector.load %arg2[%c0_90, %c0_91] : memref<128x128xbf16, #tpu.memory_space<vmem>>, vector<128x128xbf16>
    %cst_92 = arith.constant dense<0.000000e+00> : vector<8x128xf32>
    %203 = tpu.matmul %201, %202, %cst_92 {dimension_numbers = #tpu.dot_dimension_numbers<[1], [0], [0], [1], [0, 0, 1, 1], [], []>} : vector<8x128xbf16>, vector<128x128xbf16>, vector<8x128xf32> -> vector<8x128xf32>
    %204 = arith.addf %200, %203 : vector<8x128xf32>
    %205 = arith.negf %204 : vector<8x128xf32>
    %206 = math.exp %205 : vector<8x128xf32>
    %cst_93 = arith.constant 1.000000e+00 : f32
    %207 = vector.broadcast %cst_93 : f32 to vector<8x128xf32>
    %208 = arith.addf %207, %206 : vector<8x128xf32>
    %209 = arith.divf %207, %208 : vector<8x128xf32>
    %210 = math.tanh %204 : vector<8x128xf32>
    %c96_i32_94 = arith.constant 96 : i32
    %211 = tpu.dynamic_rotate %209 by %c96_i32_94 dim 1 : vector<8x128xf32>, i32 -> vector<8x128xf32>
    %c64_i32_95 = arith.constant 64 : i32
    %212 = tpu.dynamic_rotate %210 by %c64_i32_95 dim 1 : vector<8x128xf32>, i32 -> vector<8x128xf32>
    %c32_i32_96 = arith.constant 32 : i32
    %213 = tpu.dynamic_rotate %209 by %c32_i32_96 dim 1 : vector<8x128xf32>, i32 -> vector<8x128xf32>
    %214 = arith.mulf %211, %168 : vector<8x128xf32>
    %215 = arith.mulf %209, %212 : vector<8x128xf32>
    %216 = arith.addf %214, %215 : vector<8x128xf32>
    %217 = math.tanh %216 : vector<8x128xf32>
    %218 = arith.mulf %213, %217 : vector<8x128xf32>
    %c5_i32 = arith.constant 5 : i32
    %c1_i32_97 = arith.constant 1 : i32
    %219 = arith.subi %c5_i32, %c1_i32_97 : i32
    %220 = tpu.concatenate %218, %192 in 1 : vector<8x128xf32>, vector<8x128xf32> -> vector<8x256xf32>
    %221 = arith.truncf %220 : vector<8x256xf32> to vector<8x256xbf16>
    %c0_98 = arith.constant 0 : index
    %c0_99 = arith.constant 0 : index
    %222 = vector.load %arg4[%c0_98, %c0_99] : memref<256x128xbf16, #tpu.memory_space<vmem>>, vector<256x128xbf16>
    %cst_100 = arith.constant dense<0.000000e+00> : vector<8x128xf32>
    %223 = tpu.matmul %221, %222, %cst_100 {dimension_numbers = #tpu.dot_dimension_numbers<[1], [0], [0], [1], [0, 0, 1, 1], [], []>} : vector<8x256xbf16>, vector<256x128xbf16>, vector<8x128xf32> -> vector<8x128xf32>
    %c0_101 = arith.constant 0 : index
    %c0_102 = arith.constant 0 : index
    %224 = vector.load %arg5[%c0_101, %c0_102] : memref<1x128xf32, #tpu.memory_space<vmem>>, vector<1x128xf32>
    %225 = vector.broadcast %224 : vector<1x128xf32> to vector<8x128xf32>
    %226 = arith.addf %223, %225 : vector<8x128xf32>
    %227 = arith.negf %226 : vector<8x128xf32>
    %228 = math.exp %227 : vector<8x128xf32>
    %cst_103 = arith.constant 1.000000e+00 : f32
    %229 = vector.broadcast %cst_103 : f32 to vector<8x128xf32>
    %230 = arith.addf %229, %228 : vector<8x128xf32>
    %231 = arith.divf %229, %230 : vector<8x128xf32>
    %232 = math.tanh %226 : vector<8x128xf32>
    %c96_i32_104 = arith.constant 96 : i32
    %233 = tpu.dynamic_rotate %231 by %c96_i32_104 dim 1 : vector<8x128xf32>, i32 -> vector<8x128xf32>
    %c64_i32_105 = arith.constant 64 : i32
    %234 = tpu.dynamic_rotate %232 by %c64_i32_105 dim 1 : vector<8x128xf32>, i32 -> vector<8x128xf32>
    %c32_i32_106 = arith.constant 32 : i32
    %235 = tpu.dynamic_rotate %231 by %c32_i32_106 dim 1 : vector<8x128xf32>, i32 -> vector<8x128xf32>
    %236 = arith.mulf %233, %190 : vector<8x128xf32>
    %237 = arith.mulf %231, %234 : vector<8x128xf32>
    %238 = arith.addf %236, %237 : vector<8x128xf32>
    %239 = math.tanh %238 : vector<8x128xf32>
    %240 = arith.mulf %235, %239 : vector<8x128xf32>
    %c8_i32_107 = arith.constant 8 : i32
    %241 = arith.muli %219, %c8_i32_107 : i32
    %242 = tpu.assume_multiple %241, 8 : i32
    %243 = arith.index_cast %242 : i32 to index
    %c0_108 = arith.constant 0 : index
    %244 = vector.load %arg10[%243, %c0_108] : memref<64x128xf32, #tpu.memory_space<vmem>>, vector<8x128xf32>
    tpu.vector_store %arg10[%243, %c0_108], %240 {strides = array<i32>} : memref<64x128xf32, #tpu.memory_space<vmem>>, vector<8x128xf32>,
    %c8_i32_109 = arith.constant 8 : i32
    %245 = arith.muli %c5_i32, %c8_i32_109 : i32
    %246 = tpu.assume_multiple %245, 8 : i32
    %247 = arith.index_cast %246 : i32 to index
    %c0_110 = arith.constant 0 : index
    %248 = vector.load %arg9[%247, %c0_110] : memref<64x128xf32, #tpu.memory_space<vmem>>, vector<8x128xf32>
    %249 = arith.truncf %218 : vector<8x128xf32> to vector<8x128xbf16>
    %c0_111 = arith.constant 0 : index
    %c0_112 = arith.constant 0 : index
    %250 = vector.load %arg2[%c0_111, %c0_112] : memref<128x128xbf16, #tpu.memory_space<vmem>>, vector<128x128xbf16>
    %cst_113 = arith.constant dense<0.000000e+00> : vector<8x128xf32>
    %251 = tpu.matmul %249, %250, %cst_113 {dimension_numbers = #tpu.dot_dimension_numbers<[1], [0], [0], [1], [0, 0, 1, 1], [], []>} : vector<8x128xbf16>, vector<128x128xbf16>, vector<8x128xf32> -> vector<8x128xf32>
    %252 = arith.addf %248, %251 : vector<8x128xf32>
    %253 = arith.negf %252 : vector<8x128xf32>
    %254 = math.exp %253 : vector<8x128xf32>
    %cst_114 = arith.constant 1.000000e+00 : f32
    %255 = vector.broadcast %cst_114 : f32 to vector<8x128xf32>
    %256 = arith.addf %255, %254 : vector<8x128xf32>
    %257 = arith.divf %255, %256 : vector<8x128xf32>
    %258 = math.tanh %252 : vector<8x128xf32>
    %c96_i32_115 = arith.constant 96 : i32
    %259 = tpu.dynamic_rotate %257 by %c96_i32_115 dim 1 : vector<8x128xf32>, i32 -> vector<8x128xf32>
    %c64_i32_116 = arith.constant 64 : i32
    %260 = tpu.dynamic_rotate %258 by %c64_i32_116 dim 1 : vector<8x128xf32>, i32 -> vector<8x128xf32>
    %c32_i32_117 = arith.constant 32 : i32
    %261 = tpu.dynamic_rotate %257 by %c32_i32_117 dim 1 : vector<8x128xf32>, i32 -> vector<8x128xf32>
    %262 = arith.mulf %259, %216 : vector<8x128xf32>
    %263 = arith.mulf %257, %260 : vector<8x128xf32>
    %264 = arith.addf %262, %263 : vector<8x128xf32>
    %265 = math.tanh %264 : vector<8x128xf32>
    %266 = arith.mulf %261, %265 : vector<8x128xf32>
    %c6_i32 = arith.constant 6 : i32
    %c1_i32_118 = arith.constant 1 : i32
    %267 = arith.subi %c6_i32, %c1_i32_118 : i32
    %268 = tpu.concatenate %266, %240 in 1 : vector<8x128xf32>, vector<8x128xf32> -> vector<8x256xf32>
    %269 = arith.truncf %268 : vector<8x256xf32> to vector<8x256xbf16>
    %c0_119 = arith.constant 0 : index
    %c0_120 = arith.constant 0 : index
    %270 = vector.load %arg4[%c0_119, %c0_120] : memref<256x128xbf16, #tpu.memory_space<vmem>>, vector<256x128xbf16>
    %cst_121 = arith.constant dense<0.000000e+00> : vector<8x128xf32>
    %271 = tpu.matmul %269, %270, %cst_121 {dimension_numbers = #tpu.dot_dimension_numbers<[1], [0], [0], [1], [0, 0, 1, 1], [], []>} : vector<8x256xbf16>, vector<256x128xbf16>, vector<8x128xf32> -> vector<8x128xf32>
    %c0_122 = arith.constant 0 : index
    %c0_123 = arith.constant 0 : index
    %272 = vector.load %arg5[%c0_122, %c0_123] : memref<1x128xf32, #tpu.memory_space<vmem>>, vector<1x128xf32>
    %273 = vector.broadcast %272 : vector<1x128xf32> to vector<8x128xf32>
    %274 = arith.addf %271, %273 : vector<8x128xf32>
    %275 = arith.negf %274 : vector<8x128xf32>
    %276 = math.exp %275 : vector<8x128xf32>
    %cst_124 = arith.constant 1.000000e+00 : f32
    %277 = vector.broadcast %cst_124 : f32 to vector<8x128xf32>
    %278 = arith.addf %277, %276 : vector<8x128xf32>
    %279 = arith.divf %277, %278 : vector<8x128xf32>
    %280 = math.tanh %274 : vector<8x128xf32>
    %c96_i32_125 = arith.constant 96 : i32
    %281 = tpu.dynamic_rotate %279 by %c96_i32_125 dim 1 : vector<8x128xf32>, i32 -> vector<8x128xf32>
    %c64_i32_126 = arith.constant 64 : i32
    %282 = tpu.dynamic_rotate %280 by %c64_i32_126 dim 1 : vector<8x128xf32>, i32 -> vector<8x128xf32>
    %c32_i32_127 = arith.constant 32 : i32
    %283 = tpu.dynamic_rotate %279 by %c32_i32_127 dim 1 : vector<8x128xf32>, i32 -> vector<8x128xf32>
    %284 = arith.mulf %281, %238 : vector<8x128xf32>
    %285 = arith.mulf %279, %282 : vector<8x128xf32>
    %286 = arith.addf %284, %285 : vector<8x128xf32>
    %287 = math.tanh %286 : vector<8x128xf32>
    %288 = arith.mulf %283, %287 : vector<8x128xf32>
    %c8_i32_128 = arith.constant 8 : i32
    %289 = arith.muli %267, %c8_i32_128 : i32
    %290 = tpu.assume_multiple %289, 8 : i32
    %291 = arith.index_cast %290 : i32 to index
    %c0_129 = arith.constant 0 : index
    %292 = vector.load %arg10[%291, %c0_129] : memref<64x128xf32, #tpu.memory_space<vmem>>, vector<8x128xf32>
    tpu.vector_store %arg10[%291, %c0_129], %288 {strides = array<i32>} : memref<64x128xf32, #tpu.memory_space<vmem>>, vector<8x128xf32>,
    %c8_i32_130 = arith.constant 8 : i32
    %293 = arith.muli %c6_i32, %c8_i32_130 : i32
    %294 = tpu.assume_multiple %293, 8 : i32
    %295 = arith.index_cast %294 : i32 to index
    %c0_131 = arith.constant 0 : index
    %296 = vector.load %arg9[%295, %c0_131] : memref<64x128xf32, #tpu.memory_space<vmem>>, vector<8x128xf32>
    %297 = arith.truncf %266 : vector<8x128xf32> to vector<8x128xbf16>
    %c0_132 = arith.constant 0 : index
    %c0_133 = arith.constant 0 : index
    %298 = vector.load %arg2[%c0_132, %c0_133] : memref<128x128xbf16, #tpu.memory_space<vmem>>, vector<128x128xbf16>
    %cst_134 = arith.constant dense<0.000000e+00> : vector<8x128xf32>
    %299 = tpu.matmul %297, %298, %cst_134 {dimension_numbers = #tpu.dot_dimension_numbers<[1], [0], [0], [1], [0, 0, 1, 1], [], []>} : vector<8x128xbf16>, vector<128x128xbf16>, vector<8x128xf32> -> vector<8x128xf32>
    %300 = arith.addf %296, %299 : vector<8x128xf32>
    %301 = arith.negf %300 : vector<8x128xf32>
    %302 = math.exp %301 : vector<8x128xf32>
    %cst_135 = arith.constant 1.000000e+00 : f32
    %303 = vector.broadcast %cst_135 : f32 to vector<8x128xf32>
    %304 = arith.addf %303, %302 : vector<8x128xf32>
    %305 = arith.divf %303, %304 : vector<8x128xf32>
    %306 = math.tanh %300 : vector<8x128xf32>
    %c96_i32_136 = arith.constant 96 : i32
    %307 = tpu.dynamic_rotate %305 by %c96_i32_136 dim 1 : vector<8x128xf32>, i32 -> vector<8x128xf32>
    %c64_i32_137 = arith.constant 64 : i32
    %308 = tpu.dynamic_rotate %306 by %c64_i32_137 dim 1 : vector<8x128xf32>, i32 -> vector<8x128xf32>
    %c32_i32_138 = arith.constant 32 : i32
    %309 = tpu.dynamic_rotate %305 by %c32_i32_138 dim 1 : vector<8x128xf32>, i32 -> vector<8x128xf32>
    %310 = arith.mulf %307, %264 : vector<8x128xf32>
    %311 = arith.mulf %305, %308 : vector<8x128xf32>
    %312 = arith.addf %310, %311 : vector<8x128xf32>
    %313 = math.tanh %312 : vector<8x128xf32>
    %314 = arith.mulf %309, %313 : vector<8x128xf32>
    %c7_i32 = arith.constant 7 : i32
    %c1_i32_139 = arith.constant 1 : i32
    %315 = arith.subi %c7_i32, %c1_i32_139 : i32
    %316 = tpu.concatenate %314, %288 in 1 : vector<8x128xf32>, vector<8x128xf32> -> vector<8x256xf32>
    %317 = arith.truncf %316 : vector<8x256xf32> to vector<8x256xbf16>
    %c0_140 = arith.constant 0 : index
    %c0_141 = arith.constant 0 : index
    %318 = vector.load %arg4[%c0_140, %c0_141] : memref<256x128xbf16, #tpu.memory_space<vmem>>, vector<256x128xbf16>
    %cst_142 = arith.constant dense<0.000000e+00> : vector<8x128xf32>
    %319 = tpu.matmul %317, %318, %cst_142 {dimension_numbers = #tpu.dot_dimension_numbers<[1], [0], [0], [1], [0, 0, 1, 1], [], []>} : vector<8x256xbf16>, vector<256x128xbf16>, vector<8x128xf32> -> vector<8x128xf32>
    %c0_143 = arith.constant 0 : index
    %c0_144 = arith.constant 0 : index
    %320 = vector.load %arg5[%c0_143, %c0_144] : memref<1x128xf32, #tpu.memory_space<vmem>>, vector<1x128xf32>
    %321 = vector.broadcast %320 : vector<1x128xf32> to vector<8x128xf32>
    %322 = arith.addf %319, %321 : vector<8x128xf32>
    %323 = arith.negf %322 : vector<8x128xf32>
    %324 = math.exp %323 : vector<8x128xf32>
    %cst_145 = arith.constant 1.000000e+00 : f32
    %325 = vector.broadcast %cst_145 : f32 to vector<8x128xf32>
    %326 = arith.addf %325, %324 : vector<8x128xf32>
    %327 = arith.divf %325, %326 : vector<8x128xf32>
    %328 = math.tanh %322 : vector<8x128xf32>
    %c96_i32_146 = arith.constant 96 : i32
    %329 = tpu.dynamic_rotate %327 by %c96_i32_146 dim 1 : vector<8x128xf32>, i32 -> vector<8x128xf32>
    %c64_i32_147 = arith.constant 64 : i32
    %330 = tpu.dynamic_rotate %328 by %c64_i32_147 dim 1 : vector<8x128xf32>, i32 -> vector<8x128xf32>
    %c32_i32_148 = arith.constant 32 : i32
    %331 = tpu.dynamic_rotate %327 by %c32_i32_148 dim 1 : vector<8x128xf32>, i32 -> vector<8x128xf32>
    %332 = arith.mulf %329, %286 : vector<8x128xf32>
    %333 = arith.mulf %327, %330 : vector<8x128xf32>
    %334 = arith.addf %332, %333 : vector<8x128xf32>
    %335 = math.tanh %334 : vector<8x128xf32>
    %336 = arith.mulf %331, %335 : vector<8x128xf32>
    %c8_i32_149 = arith.constant 8 : i32
    %337 = arith.muli %315, %c8_i32_149 : i32
    %338 = tpu.assume_multiple %337, 8 : i32
    %339 = arith.index_cast %338 : i32 to index
    %c0_150 = arith.constant 0 : index
    %340 = vector.load %arg10[%339, %c0_150] : memref<64x128xf32, #tpu.memory_space<vmem>>, vector<8x128xf32>
    tpu.vector_store %arg10[%339, %c0_150], %336 {strides = array<i32>} : memref<64x128xf32, #tpu.memory_space<vmem>>, vector<8x128xf32>,
    %c8_i32_151 = arith.constant 8 : i32
    %341 = arith.muli %c7_i32, %c8_i32_151 : i32
    %342 = tpu.assume_multiple %341, 8 : i32
    %343 = arith.index_cast %342 : i32 to index
    %c0_152 = arith.constant 0 : index
    %344 = vector.load %arg9[%343, %c0_152] : memref<64x128xf32, #tpu.memory_space<vmem>>, vector<8x128xf32>
    %345 = arith.truncf %314 : vector<8x128xf32> to vector<8x128xbf16>
    %c0_153 = arith.constant 0 : index
    %c0_154 = arith.constant 0 : index
    %346 = vector.load %arg2[%c0_153, %c0_154] : memref<128x128xbf16, #tpu.memory_space<vmem>>, vector<128x128xbf16>
    %cst_155 = arith.constant dense<0.000000e+00> : vector<8x128xf32>
    %347 = tpu.matmul %345, %346, %cst_155 {dimension_numbers = #tpu.dot_dimension_numbers<[1], [0], [0], [1], [0, 0, 1, 1], [], []>} : vector<8x128xbf16>, vector<128x128xbf16>, vector<8x128xf32> -> vector<8x128xf32>
    %348 = arith.addf %344, %347 : vector<8x128xf32>
    %349 = arith.negf %348 : vector<8x128xf32>
    %350 = math.exp %349 : vector<8x128xf32>
    %cst_156 = arith.constant 1.000000e+00 : f32
    %351 = vector.broadcast %cst_156 : f32 to vector<8x128xf32>
    %352 = arith.addf %351, %350 : vector<8x128xf32>
    %353 = arith.divf %351, %352 : vector<8x128xf32>
    %354 = math.tanh %348 : vector<8x128xf32>
    %c96_i32_157 = arith.constant 96 : i32
    %355 = tpu.dynamic_rotate %353 by %c96_i32_157 dim 1 : vector<8x128xf32>, i32 -> vector<8x128xf32>
    %c64_i32_158 = arith.constant 64 : i32
    %356 = tpu.dynamic_rotate %354 by %c64_i32_158 dim 1 : vector<8x128xf32>, i32 -> vector<8x128xf32>
    %c32_i32_159 = arith.constant 32 : i32
    %357 = tpu.dynamic_rotate %353 by %c32_i32_159 dim 1 : vector<8x128xf32>, i32 -> vector<8x128xf32>
    %358 = arith.mulf %355, %312 : vector<8x128xf32>
    %359 = arith.mulf %353, %356 : vector<8x128xf32>
    %360 = arith.addf %358, %359 : vector<8x128xf32>
    %361 = math.tanh %360 : vector<8x128xf32>
    %362 = arith.mulf %357, %361 : vector<8x128xf32>
    %c7_i32_160 = arith.constant 7 : i32
    %363 = tpu.concatenate %362, %336 in 1 : vector<8x128xf32>, vector<8x128xf32> -> vector<8x256xf32>
    %364 = arith.truncf %363 : vector<8x256xf32> to vector<8x256xbf16>
    %c0_161 = arith.constant 0 : index
    %c0_162 = arith.constant 0 : index
    %365 = vector.load %arg4[%c0_161, %c0_162] : memref<256x128xbf16, #tpu.memory_space<vmem>>, vector<256x128xbf16>
    %cst_163 = arith.constant dense<0.000000e+00> : vector<8x128xf32>
    %366 = tpu.matmul %364, %365, %cst_163 {dimension_numbers = #tpu.dot_dimension_numbers<[1], [0], [0], [1], [0, 0, 1, 1], [], []>} : vector<8x256xbf16>, vector<256x128xbf16>, vector<8x128xf32> -> vector<8x128xf32>
    %c0_164 = arith.constant 0 : index
    %c0_165 = arith.constant 0 : index
    %367 = vector.load %arg5[%c0_164, %c0_165] : memref<1x128xf32, #tpu.memory_space<vmem>>, vector<1x128xf32>
    %368 = vector.broadcast %367 : vector<1x128xf32> to vector<8x128xf32>
    %369 = arith.addf %366, %368 : vector<8x128xf32>
    %370 = arith.negf %369 : vector<8x128xf32>
    %371 = math.exp %370 : vector<8x128xf32>
    %cst_166 = arith.constant 1.000000e+00 : f32
    %372 = vector.broadcast %cst_166 : f32 to vector<8x128xf32>
    %373 = arith.addf %372, %371 : vector<8x128xf32>
    %374 = arith.divf %372, %373 : vector<8x128xf32>
    %375 = math.tanh %369 : vector<8x128xf32>
    %c96_i32_167 = arith.constant 96 : i32
    %376 = tpu.dynamic_rotate %374 by %c96_i32_167 dim 1 : vector<8x128xf32>, i32 -> vector<8x128xf32>
    %c64_i32_168 = arith.constant 64 : i32
    %377 = tpu.dynamic_rotate %375 by %c64_i32_168 dim 1 : vector<8x128xf32>, i32 -> vector<8x128xf32>
    %c32_i32_169 = arith.constant 32 : i32
    %378 = tpu.dynamic_rotate %374 by %c32_i32_169 dim 1 : vector<8x128xf32>, i32 -> vector<8x128xf32>
    %379 = arith.mulf %376, %334 : vector<8x128xf32>
    %380 = arith.mulf %374, %377 : vector<8x128xf32>
    %381 = arith.addf %379, %380 : vector<8x128xf32>
    %382 = math.tanh %381 : vector<8x128xf32>
    %383 = arith.mulf %378, %382 : vector<8x128xf32>
    %c56 = arith.constant 56 : index
    %c0_170 = arith.constant 0 : index
    %384 = vector.load %arg10[%c56, %c0_170] : memref<64x128xf32, #tpu.memory_space<vmem>>, vector<8x128xf32>
    tpu.vector_store %arg10[%c56, %c0_170], %383 {strides = array<i32>} : memref<64x128xf32, #tpu.memory_space<vmem>>, vector<8x128xf32>,
    %c0_171 = arith.constant 0 : index
    %c0_172 = arith.constant 0 : index
    %385 = vector.load %arg10[%c0_171, %c0_172] : memref<64x128xf32, #tpu.memory_space<vmem>>, vector<64x128xf32>
    %386 = arith.truncf %385 : vector<64x128xf32> to vector<64x128xbf16>
    %c0_173 = arith.constant 0 : index
    %c0_174 = arith.constant 0 : index
    %387 = vector.load %arg6[%c0_173, %c0_174] : memref<128x128xbf16, #tpu.memory_space<vmem>>, vector<128x128xbf16>
    %cst_175 = arith.constant dense<0.000000e+00> : vector<64x128xf32>
    %388 = tpu.matmul %386, %387, %cst_175 {dimension_numbers = #tpu.dot_dimension_numbers<[1], [0], [0], [1], [0, 0, 1, 1], [], []>} : vector<64x128xbf16>, vector<128x128xbf16>, vector<64x128xf32> -> vector<64x128xf32>
    %c0_176 = arith.constant 0 : index
    %c0_177 = arith.constant 0 : index
    %389 = vector.load %arg7[%c0_176, %c0_177] : memref<1x128xf32, #tpu.memory_space<vmem>>, vector<1x128xf32>
    %390 = vector.broadcast %389 : vector<1x128xf32> to vector<64x128xf32>
    %391 = arith.addf %388, %390 : vector<64x128xf32>
    %c0_178 = arith.constant 0 : index
    %c0_179 = arith.constant 0 : index
    %392 = vector.load %arg8[%c0_178, %c0_179] : memref<64x128xf32, #tpu.memory_space<vmem>>, vector<64x128xf32>
    tpu.vector_store %arg8[%c0_178, %c0_179], %391 {strides = array<i32>} : memref<64x128xf32, #tpu.memory_space<vmem>>, vector<64x128xf32>,
    return
  }
}

</mosaic_0001>

<bundles_post_ra>
// kernel: tpu_custom_call.1
= control target key start
LH: loop header
LB: loop body
LE: loop exit
PB: predicated region body
PF: predicated region fallthrough
CT: control target
= control target key end

     0   :  { %13 = vsyncpa [#allocation5], 0  ;;  %s4592_s0 = inlined_call_operand.hbm [shape: bf16[64,128], index: 0, kind: input, shape index: {}]   ;;  %s4593_s1 = inlined_call_operand.hbm [shape: bf16[128,128], index: 1, kind: input, shape index: {}]   ;;  %s4594_s2 = inlined_call_operand.hbm [shape: bf16[128,128], index: 2, kind: input, shape index: {}]   ;;  %s4595_s3 = inlined_call_operand.vmem [shape: f32[1,128], index: 3, kind: input, shape index: {}]   ;;  %s4596_s4 = inlined_call_operand.hbm [shape: bf16[256,128], index: 4, kind: input, shape index: {}]   ;;  %s4597_s5 = inlined_call_operand.vmem [shape: f32[1,128], index: 5, kind: input, shape index: {}]   ;;  %s4598_s6 = inlined_call_operand.hbm [shape: bf16[128,128], index: 6, kind: input, shape index: {}]   ;;  %s4599_s7 = inlined_call_operand.vmem [shape: f32[1,128], index: 7, kind: input, shape index: {}]   ;;  %s4600_s8 = inlined_call_operand.hbm [shape: f32[64,128], index: 8, kind: output, shape index: {}]  }
   0x1   :  { %14 = vsyncpa [#allocation8], 0 }
   0x2   :  { %15 = vsyncpa [#allocation11], 0 }
   0x3   :  { %16 = vsyncpa [#allocation6], 0  ;;  %s4226_s27 = smov [#allocation7]   ;;  %s4227_s29 = smov [#allocation10]  }
   0x4   :  { %s34_s28 = sshll.u32 %s4226_s27, 4  ;;  %s60_s30 = sshll.u32 %s4227_s29, 4  ;;  %s35_s28 = int_to_ptr.vmem [resolvable:$true] %s34_s28  ;;  %s61_s30 = int_to_ptr.vmem [resolvable:$true] %s60_s30 }
   0x5   :  { %s4106_s9 = scalar_lea.vmem %s35_s28, 1024  ;;  %p4111_p1 = scmp.lt.s32.totalorder %s35_s28, %s35_s28 }
   0x6   :  { %p4107_p0 = scmp.ne.s32.totalorder %s35_s28, %s4106_s9  ;;  %p4112_p2 = scmp.lt.s32.totalorder %s4106_s9, %s4106_s9 }
   0x8   :  { %p4113_p3 = por %p4112_p2, %p4111_p1 }
   0xa   :  { %p4114_p4 = pnand %p4113_p3, %p4107_p0 }
   0xc   :  { %4117 = shalt.err (!%p4114_p4)
}
   0xd   :  { %s4228_s10 = smov 64   ;;  %s4229_s11 = smov 4  }
   0xe   :  { %40 = dma.hbm_to_vmem [thread:$0]  %s4593_s1, 1024, %s35_s28, [#allocation8], %s4228_s10, %s4228_s10, %s4229_s11  }
   0xf   :  { %s4126_s14 = scalar_lea.vmem %s61_s30, 2048  ;;  %p4131_p6 = scmp.lt.s32.totalorder %s61_s30, %s61_s30 }
  0x10   :  { %p4127_p5 = scmp.ne.s32.totalorder %s61_s30, %s4126_s14  ;;  %p4132_p7 = scmp.lt.s32.totalorder %s4126_s14, %s4126_s14 }
  0x12   :  { %p4133_p8 = por %p4132_p7, %p4131_p6 }
  0x14   :  { %p4134_p9 = pnand %p4133_p8, %p4127_p5 }
  0x16   :  { %4137 = shalt.err (!%p4134_p9)
}
  0x17   :  { %66 = dma.hbm_to_vmem [thread:$0]  %s4596_s4, 2048, %s61_s30, [#allocation11], %s4228_s10, %s4228_s10, %s4229_s11  }
  0x18   :  { %s4230_s17 = smov [#allocation4]   ;;  %s4231_s19 = smov [#allocation9]  }
  0x19   :  { %s22_s18 = sshll.u32 %s4230_s17, 4  ;;  %s46_s20 = sshll.u32 %s4231_s19, 4  ;;  %s23_s18 = int_to_ptr.vmem [resolvable:$true] %s22_s18  ;;  %s47_s20 = int_to_ptr.vmem [resolvable:$true] %s46_s20 }
  0x1a   :  { %s4146_s1 = scalar_lea.vmem %s23_s18, 512  ;;  %p4151_p11 = scmp.lt.s32.totalorder %s23_s18, %s23_s18 }
  0x1b   :  { %p4147_p10 = scmp.ne.s32.totalorder %s23_s18, %s4146_s1  ;;  %p4152_p12 = scmp.lt.s32.totalorder %s4146_s1, %s4146_s1 }
  0x1d   :  { %p4153_p13 = por %p4152_p12, %p4151_p11 }
  0x1f   :  { %p4154_p0 = pnand %p4153_p13, %p4147_p10 }
  0x21   :  { %4157 = shalt.err (!%p4154_p0)
}
  0x22   :  { %28 = dma.hbm_to_vmem [thread:$0]  %s4592_s0, 512, %s23_s18, [#allocation5], %s4228_s10, %s4228_s10, %s4229_s11  }
  0x23   :  { %s4166_s4 = scalar_lea.vmem %s47_s20, 1024  ;;  %p4171_p2 = scmp.lt.s32.totalorder %s47_s20, %s47_s20 }
  0x24   :  { %p4167_p1 = scmp.ne.s32.totalorder %s47_s20, %s4166_s4  ;;  %p4172_p3 = scmp.lt.s32.totalorder %s4166_s4, %s4166_s4 }
  0x26   :  { %p4173_p4 = por %p4172_p3, %p4171_p2 }
  0x28   :  { %p4174_p5 = pnand %p4173_p4, %p4167_p1 }
  0x2a   :  { %4177 = shalt.err (!%p4174_p5)
}
  0x2b   :  { %52 = dma.hbm_to_vmem [thread:$0]  %s4594_s2, 1024, %s47_s20, [#allocation8], %s4228_s10, %s4228_s10, %s4229_s11  }
  0x2c   :  { %s4232_s25 = smov [#allocation12]  }
  0x2d   :  { %s74_s26 = sshll.u32 %s4232_s25, 4  ;;  %s75_s26 = int_to_ptr.vmem [resolvable:$true] %s74_s26 }
  0x2e   :  { %s4186_s27 = scalar_lea.vmem %s75_s26, 1024  ;;  %p4191_p7 = scmp.lt.s32.totalorder %s75_s26, %s75_s26 }
  0x2f   :  { %p4187_p6 = scmp.ne.s32.totalorder %s75_s26, %s4186_s27  ;;  %p4192_p8 = scmp.lt.s32.totalorder %s4186_s27, %s4186_s27 }
  0x31   :  { %p4193_p9 = por %p4192_p8, %p4191_p7 }
  0x33   :  { %p4194_p10 = pnand %p4193_p9, %p4187_p6 }
  0x35   :  { %4197 = shalt.err (!%p4194_p10)
}
  0x36   :  { %80 = dma.hbm_to_vmem [thread:$0]  %s4598_s6, 1024, %s75_s26, [#allocation11], %s4228_s10, %s4228_s10, %s4229_s11  }
  0x37   :  { %4218 = dma.done.wait [#allocation5], 512  }
  0x38   :  { %4219 = vsyncadd [#allocation5], 4294966784 }
  0x39   :  { %4220 = dma.done.wait [#allocation8], 2048  }
  0x3a   :  { %4221 = vsyncadd [#allocation8], 4294965248 }
  0x3b   :  { %4222 = dma.done.wait [#allocation11], 3072  }
  0x3c   :  { %4223 = vsyncadd [#allocation11], 4294964224  ;;  %v4233_v0 = vmov 0.0   ;;  %vm4234_vm0 = vmmov 0   ;;  %v3757_v1 = vld [vmem:[#allocation7 + $0x38] sm:$0xff]   ;;  %v3759_v3 = vld [vmem:[#allocation7 + $0x30] sm:$0xff]  }
  0x3d   :  { %3557 = vmatprep.subr.bf16.mxu1 %v4233_v0  ;;  %3573 = vmatprep.mubr.msk.bf16.mxu1 %vm4234_vm0, %v4233_v0  ;;  %v3758_v2 = vld [vmem:[#allocation9 + $0x38] sm:$0xff]   ;;  %v3760_v4 = vld [vmem:[#allocation9 + $0x30] sm:$0xff]   ;;  %v3761_v5 = vld [vmem:[#allocation7 + $0x28] sm:$0xff]   ;;  %v4235_v19 = vmov 0   ;;  %s4236_s29 = smov 32   ;;  %s4237_s30 = smov 96  }
  0x3e   :  { %3533 = vmatprep.subr.bf16.mxu0 %v3757_v1  ;;  %3558 = vmatpush3.bf16.msra.mxu1 %v3758_v2  ;;  %v3762_v6 = vld [vmem:[#allocation9 + $0x28] sm:$0xff]   ;;  %v3763_v7 = vld [vmem:[#allocation7 + $0x20] sm:$0xff]   ;;  %v3765_v9 = vld [vmem:[#allocation7 + $0x18] sm:$0xff]   ;;  %v4238_v54 = vmov 0.0|0.0  }
  0x3f   :  { %3534 = vmatpush3.bf16.msra.mxu0 %v3757_v1  ;;  %3559 = vmatprep.subr.bf16.mxu1 %v4233_v0  ;;  %v3764_v8 = vld [vmem:[#allocation9 + $0x20] sm:$0xff]   ;;  %v3766_v10 = vld [vmem:[#allocation9 + $0x18] sm:$0xff]   ;;  %v3767_v11 = vld [vmem:[#allocation7 + $0x10] sm:$0xff]  }
  0x40   :  { %3535 = vmatprep.subr.bf16.mxu0 %v3759_v3  ;;  %v3773_v12 = vld [vmem:[#allocation4] sm:$0xff]   ;;  %v3768_v13 = vld [vmem:[#allocation9 + $0x10] sm:$0xff]   ;;  %v3769_v14 = vld [vmem:[#allocation7 + $0x8] sm:$0xff]  }
  0x41   :  { %3549 = vmatprep.mubr.bf16.mxu0 %v3773_v12  ;;  %v3770_v15 = vld [vmem:[#allocation9 + $0x8] sm:$0xff]   ;;  %v3771_v16 = vld [vmem:[#allocation7] sm:$0xff]   ;;  %v3775_v20 = vld [vmem:[#allocation10 + $0x78] sm:$0xff]  }
  0x42   :  { %3560 = vmatpush3.bf16.msra.mxu1 %v3760_v4  ;;  %v3772_v17 = vld [vmem:[#allocation9] sm:$0xff]   ;;  %v3774_v18 = vld [vmem:[#allocation4 + $0x8] sm:$0xff]   ;;  %v3776_v21 = vld [vmem:[#allocation10 + $0x38] sm:$0xff]  }
  0x43   :  { %3536 = vmatpush3.bf16.msra.mxu0 %v3759_v3  ;;  %3561 = vmatprep.subr.bf16.mxu1 %v4233_v0  ;;  %v3777_v22 = vld [vmem:[#allocation9 + $0x38] sm:$0xff]   ;;  %v3778_v23 = vld [vmem:[#allocation10 + $0x70] sm:$0xff]   ;;  %v4337_v28 = vld [vmem:[%s4595_s3] ss:$0 sm:$0xff] }
  0x44   :  { %3537 = vmatprep.subr.bf16.mxu0 %v3761_v5  ;;  %v3779_v24 = vld [vmem:[#allocation10 + $0x30] sm:$0xff]   ;;  %v3781_v38 = vld [vmem:[#allocation10 + $0x68] sm:$0xff]   ;;  %v3784_v41 = vld [vmem:[#allocation10 + $0x60] sm:$0xff]  }
  0x45   :  { %v3780_v25 = vld [vmem:[#allocation9 + $0x30] sm:$0xff]   ;;  %v3782_v39 = vld [vmem:[#allocation10 + $0x28] sm:$0xff]   ;;  %v3785_v42 = vld [vmem:[#allocation10 + $0x20] sm:$0xff]  }
  0x46   :  { %3562 = vmatpush3.bf16.msra.mxu1 %v3762_v6  ;;  %v3783_v40 = vld [vmem:[#allocation9 + $0x28] sm:$0xff]   ;;  %v3786_v43 = vld [vmem:[#allocation9 + $0x20] sm:$0xff]   ;;  %v3787_v44 = vld [vmem:[#allocation10 + $0x58] sm:$0xff]  }
  0x47   :  { %3538 = vmatpush3.bf16.msra.mxu0 %v3761_v5  ;;  %3563 = vmatprep.subr.bf16.mxu1 %v4233_v0  ;;  %v3788_v45 = vld [vmem:[#allocation4 + $0x10] sm:$0xff]   ;;  %v3789_v46 = vld [vmem:[#allocation10 + $0x18] sm:$0xff]   ;;  %v3795_v53 = vld [vmem:[#allocation10 + $0x48] sm:$0xff]  }
  0x48   :  { %3539 = vmatprep.subr.bf16.mxu0 %v3763_v7  ;;  %v3790_v47 = vld [vmem:[#allocation9 + $0x18] sm:$0xff]   ;;  %v3792_v49 = vld [vmem:[#allocation10 + $0x50] sm:$0xff]   ;;  %v3796_v56 = vld [vmem:[#allocation10 + $0x8] sm:$0xff]  }
  0x49   :  { %v3791_v48 = vld [vmem:[#allocation4 + $0x18] sm:$0xff]   ;;  %v3793_v51 = vld [vmem:[#allocation10 + $0x10] sm:$0xff]   ;;  %v3797_v57 = vld [vmem:[#allocation9 + $0x8] sm:$0xff]  }
  0x4a   :  { %3564 = vmatpush3.bf16.msra.mxu1 %v3764_v8  ;;  %v3794_v52 = vld [vmem:[#allocation9 + $0x10] sm:$0xff]   ;;  %v3798_v58 = vld [vmem:[#allocation10 + $0x40] sm:$0xff]  }
  0x4b   :  { %3540 = vmatpush3.bf16.msra.mxu0 %v3763_v7  ;;  %3565 = vmatprep.subr.bf16.mxu1 %v4233_v0  ;;  %v3799_v59 = vld [vmem:[#allocation10] sm:$0xff]  }
  0x4c   :  { %3541 = vmatprep.subr.bf16.mxu0 %v3765_v9  ;;  %v3800_v60 = vld [vmem:[#allocation9] sm:$0xff]  }
  0x4e   :  { %3566 = vmatpush3.bf16.msra.mxu1 %v3766_v10 }
  0x4f   :  { %3542 = vmatpush3.bf16.msra.mxu0 %v3765_v9  ;;  %3567 = vmatprep.subr.bf16.mxu1 %v4233_v0 }
  0x50   :  { %3543 = vmatprep.subr.bf16.mxu0 %v3767_v11 }
  0x52   :  { %3568 = vmatpush3.bf16.msra.mxu1 %v3768_v13 }
  0x53   :  { %3544 = vmatpush3.bf16.msra.mxu0 %v3767_v11  ;;  %3569 = vmatprep.subr.bf16.mxu1 %v4233_v0 }
  0x54   :  { %3545 = vmatprep.subr.bf16.mxu0 %v3769_v14 }
  0x56   :  { %3570 = vmatpush3.bf16.msra.mxu1 %v3770_v15 }
  0x57   :  { %3546 = vmatpush3.bf16.msra.mxu0 %v3769_v14  ;;  %3571 = vmatprep.subr.bf16.mxu1 %v4233_v0 }
  0x58   :  { %3547 = vmatprep.subr.bf16.mxu0 %v3771_v16 }
  0x5a   :  { %3572 = vmatpush3.bf16.msra.mxu1 %v3772_v17  ;;  %v4368_v17 = vld [vmem:[%s4597_s5] ss:$0 sm:$0xff] }
  0x5b   :  { %3548 = vmatpush3.bf16.msra.mxu0 %v3771_v16  ;;  %3577 = vmatprep.subr.bf16.mxu1 %v4233_v0 }
  0x5c   :  { %3282 = vmatprep.subr.bf16.mxu0 %v3775_v20 }
  0x5d   :  { %3574 = vmatmul.mubr.bf16.vlgmr.msra.gmra.mxu1 %v4235_v19 }
  0x5e   :  { %3550 = vmatmul.mubr.bf16.vlgmr.msra.gmra.mxu0 %v3774_v18  ;;  %3593 = vmatprep.mubr.msk.bf16.mxu1 %vm4234_vm0, %v4233_v0 }
  0x5f   :  { %3578 = vmatpush3.bf16.msra.mxu1 %v3777_v22  ;;  %3283 = vmatpush3.bf16.msra.mxu0 %v3776_v21 }
  0x60   :  { %3579 = vmatprep.subr.bf16.mxu1 %v4233_v0  ;;  %3284 = vmatprep.subr.bf16.mxu0 %v3778_v23 }
  0x61   :  { %3553 = vmatprep.mubr.bf16.mxu0 %v3788_v45  ;;  %v3810_v45 = vld [vmem:[#allocation10 + $0x60] sm:$0xff]  }
  0x63   :  { %3580 = vmatpush3.bf16.msra.mxu1 %v3780_v25  ;;  %3285 = vmatpush3.bf16.msra.mxu0 %v3779_v24 }
  0x64   :  { %3581 = vmatprep.subr.bf16.mxu1 %v4233_v0  ;;  %3286 = vmatprep.subr.bf16.mxu0 %v3781_v38  ;;  %v3806_v38 = vld [vmem:[#allocation9 + $0x30] sm:$0xff]  }
  0x66   :  { %3554 = vmatmul.mubr.bf16.gmra.mxu0 %v3791_v48 }
  0x67   :  { %3582 = vmatpush3.bf16.msra.mxu1 %v3783_v40  ;;  %3287 = vmatpush3.bf16.msra.mxu0 %v3782_v39 }
  0x68   :  { %3583 = vmatprep.subr.bf16.mxu1 %v4233_v0  ;;  %3288 = vmatprep.subr.bf16.mxu0 %v3784_v41 }
  0x69   :  { %568 = vmatprep.mubr.bf16.mxu0 %v4238_v54  ;;  %v3817_v54 = vld [vmem:[#allocation10 + $0x10] sm:$0xff]  }
  0x6b   :  { %3289 = vmatpush3.bf16.msra.mxu0 %v3785_v42  ;;  %3584 = vmatpush3.bf16.msra.mxu1 %v3786_v43  ;;  %v3807_v42 = vld [vmem:[#allocation10 + $0x68] sm:$0xff]  }
  0x6c   :  { %3585 = vmatprep.subr.bf16.mxu1 %v4233_v0  ;;  %3290 = vmatprep.subr.bf16.mxu0 %v3787_v44  ;;  %v3808_v43 = vld [vmem:[#allocation10 + $0x28] sm:$0xff]  }
  0x6d   :  { %v3809_v44 = vld [vmem:[#allocation9 + $0x28] sm:$0xff]  }
  0x6f   :  { %3291 = vmatpush3.bf16.msra.mxu0 %v3789_v46  ;;  %3586 = vmatpush3.bf16.msra.mxu1 %v3790_v47  ;;  %v3811_v46 = vld [vmem:[#allocation10 + $0x20] sm:$0xff]  }
  0x70   :  { %3292 = vmatprep.subr.bf16.mxu0 %v3792_v49  ;;  %3587 = vmatprep.subr.bf16.mxu1 %v4233_v0  ;;  %v3812_v47 = vld [vmem:[#allocation9 + $0x20] sm:$0xff]   ;;  %v3813_v49 = vld [vmem:[#allocation10 + $0x58] sm:$0xff]  }
  0x73   :  { %3293 = vmatpush3.bf16.msra.mxu0 %v3793_v51  ;;  %3588 = vmatpush3.bf16.msra.mxu1 %v3794_v52  ;;  %v3815_v51 = vld [vmem:[#allocation9 + $0x18] sm:$0xff]  }
  0x74   :  { %3294 = vmatprep.subr.bf16.mxu0 %v3795_v53  ;;  %3589 = vmatprep.subr.bf16.mxu1 %v4233_v0  ;;  %v3816_v53 = vld [vmem:[#allocation10 + $0x50] sm:$0xff]  }
  0x77   :  { %3295 = vmatpush3.bf16.msra.mxu0 %v3796_v56  ;;  %3590 = vmatpush3.bf16.msra.mxu1 %v3797_v57  ;;  %v3819_v56 = vld [vmem:[#allocation10 + $0x48] sm:$0xff]  }
  0x78   :  { %3296 = vmatprep.subr.bf16.mxu0 %v3798_v58  ;;  %3591 = vmatprep.subr.bf16.mxu1 %v4233_v0  ;;  %v3820_v57 = vld [vmem:[#allocation10 + $0x8] sm:$0xff]  }
  0x79   :  { %v3821_v58 = vld [vmem:[#allocation9 + $0x8] sm:$0xff]  }
  0x7b   :  { %3297 = vmatpush3.bf16.msra.mxu0 %v3799_v59  ;;  %3592 = vmatpush3.bf16.msra.mxu1 %v3800_v60  ;;  %v3822_v59 = vld [vmem:[#allocation10 + $0x40] sm:$0xff]  }
  0x7c   :  { %3597 = vmatprep.subr.bf16.mxu1 %v4233_v0  ;;  %v3823_v60 = vld [vmem:[#allocation10] sm:$0xff]  }
 0x11d   :  { %v374_v26 = vpop.f32.mrf.mxu1 }
 0x11e   :  { %v4332_v27 = vpop.f32.mrf.mxu0 }
 0x11f   :  { %v3575_v29 = vpop.f32.mrf.mxu1 }
 0x120   :  { %v236_v30 = vpop.f32.mrf.mxu0 }
 0x121   :  { %v237_v31 = vadd.f32 %v4337_v28, %v236_v30  ;;  %v377_v32 = vpop.f32.mrf.mxu1  ;;  %v3801_v30 = vld [vmem:[#allocation10 + $0x78] sm:$0xff]  }
 0x122   :  { %v4354_v7 = vpop.f32.mrf.mxu0  ;;  %v3803_v32 = vld [vmem:[#allocation9 + $0x38] sm:$0xff]   ;;  %3313 = vmatprep.subr.bf16.mxu0 %v3801_v30 }
 0x123   :  { %v380_v33 = vadd.f32 %v374_v26, %v237_v31  ;;  %v3576_v34 = vpop.f32.mrf.mxu1  ;;  %v3802_v31 = vld [vmem:[#allocation10 + $0x38] sm:$0xff]  }
 0x124   :  { %v239_v8 = vpop.f32.mrf.mxu0 }
 0x125   :  { %v3044_v35 = vmul.f32 -1.442695, %v380_v33  ;;  %v240_v13 = vadd.f32 %v4337_v28, %v239_v8 }
 0x126   :  { %v4356_v9 = vpop.f32.mrf.mxu0 }
 0x127   :  { %3969 = vpow2.f32 %v3044_v35 }
 0x128   :  { %v4358_v10 = vpop.f32.mrf.mxu0 }
 0x12a   :  { %v4360_v11 = vpop.f32.mrf.mxu0 }
 0x12c   :  { %v4362_v12 = vpop.f32.mrf.mxu0 }
 0x134   :  { %v3970_v36 = vpop.eup %3969 }
 0x135   :  { %v384_v37 = vadd.f32 1.0, %v3970_v36  ;;  %v3804_v36 = vld [vmem:[#allocation10 + $0x70] sm:$0xff]  }
 0x137   :  { %3971 = vrcp.f32 %v384_v37  ;;  %v3805_v37 = vld [vmem:[#allocation10 + $0x30] sm:$0xff]  }
 0x138   :  { %3973 = vtanh.f32 %v380_v33 }
 0x144   :  { %v3972_v50 = vpop.eup %3971 }
 0x145   :  { %392 = vrot.lane.b32.xlu1 %v3972_v50, %s4236_s29  ;;  %388 = vrot.lane.b32.xlu0 %v3972_v50, %s4237_s30  ;;  %v3974_v55 = vpop.eup %3973 }
 0x149   :  { %390 = vrot.lane.b32.xlu0 %v3974_v55, %s4228_s10  ;;  %v3818_v55 = vld [vmem:[#allocation9 + $0x10] sm:$0xff]  }
 0x1b7   :  { %v389_v61 = vpop.permute.xlu0 %388  ;;  %v393_v4 = vpop.permute.xlu1 %392 }
 0x1b8   :  { %v394_v63 = vmul.f32 0.0, %v389_v61  ;;  %v3824_v61 = vld [vmem:[#allocation9] sm:$0xff]  }
 0x1bb   :  { %v391_v62 = vpop.permute.xlu0 %390 }
 0x1bc   :  { %v395_v1 = vmul.f32 %v3972_v50, %v391_v62  ;;  %v3814_v50 = vld [vmem:[#allocation10 + $0x18] sm:$0xff]  }
 0x1be   :  { %v4349_v2 = vadd.f32 %v395_v1, %v394_v63 }
 0x1c0   :  { %3975 = vtanh.f32 %v4349_v2 }
 0x1cd   :  { %v3976_v3 = vpop.eup %3975 }
 0x1ce   :  { %v398_v5 = vmul.f32 %v3976_v3, %v393_v4 }
 0x1d0   :  { %v399_v6 = vpack.c.bf16 %v398_v5, %v398_v5 }
 0x1d2   :  { %569 = vmatmul.mubr.bf16.vlgmr.msra.gmra.mxu0 %v399_v6  ;;  %3594 = vmatmul.mubr.bf16.vlgmr.msra.gmra.mxu1 %v399_v6 }
 0x1d3   :  { %3613 = vmatprep.mubr.msk.bf16.mxu1 %vm4234_vm0, %v4233_v0  ;;  %3598 = vmatpush3.bf16.msra.mxu1 %v3803_v32 }
 0x1d4   :  { %3314 = vmatpush3.bf16.msra.mxu0 %v3802_v31  ;;  %3599 = vmatprep.subr.bf16.mxu1 %v4233_v0 }
 0x1d5   :  { %3315 = vmatprep.subr.bf16.mxu0 %v3804_v36 }
 0x1d7   :  { %3600 = vmatpush3.bf16.msra.mxu1 %v3806_v38 }
 0x1d8   :  { %3316 = vmatpush3.bf16.msra.mxu0 %v3805_v37  ;;  %3601 = vmatprep.subr.bf16.mxu1 %v4233_v0 }
 0x1d9   :  { %3317 = vmatprep.subr.bf16.mxu0 %v3807_v42 }
 0x1db   :  { %3602 = vmatpush3.bf16.msra.mxu1 %v3809_v44  ;;  %v3828_v44 = vld [vmem:[#allocation10 + $0x70] sm:$0xff]  }
 0x1dc   :  { %3318 = vmatpush3.bf16.msra.mxu0 %v3808_v43  ;;  %3603 = vmatprep.subr.bf16.mxu1 %v4233_v0 }
 0x1dd   :  { %3319 = vmatprep.subr.bf16.mxu0 %v3810_v45  ;;  %v3829_v45 = vld [vmem:[#allocation10 + $0x30] sm:$0xff]  }
 0x1df   :  { %3604 = vmatpush3.bf16.msra.mxu1 %v3812_v47 }
 0x1e0   :  { %3320 = vmatpush3.bf16.msra.mxu0 %v3811_v46  ;;  %3605 = vmatprep.subr.bf16.mxu1 %v4233_v0  ;;  %v3830_v46 = vld [vmem:[#allocation9 + $0x30] sm:$0xff]  }
 0x1e1   :  { %3321 = vmatprep.subr.bf16.mxu0 %v3813_v49 }
 0x1e3   :  { %3606 = vmatpush3.bf16.msra.mxu1 %v3815_v51  ;;  %v3832_v51 = vld [vmem:[#allocation10 + $0x28] sm:$0xff]  }
 0x1e4   :  { %3322 = vmatpush3.bf16.msra.mxu0 %v3814_v50  ;;  %3607 = vmatprep.subr.bf16.mxu1 %v4233_v0  ;;  %v3831_v50 = vld [vmem:[#allocation10 + $0x68] sm:$0xff]  }
 0x1e5   :  { %3323 = vmatprep.subr.bf16.mxu0 %v3816_v53  ;;  %v3834_v53 = vld [vmem:[#allocation10 + $0x60] sm:$0xff]  }
 0x1e7   :  { %3608 = vmatpush3.bf16.msra.mxu1 %v3818_v55  ;;  %v3836_v55 = vld [vmem:[#allocation9 + $0x20] sm:$0xff]  }
 0x1e8   :  { %3324 = vmatpush3.bf16.msra.mxu0 %v3817_v54  ;;  %3609 = vmatprep.subr.bf16.mxu1 %v4233_v0  ;;  %v3835_v54 = vld [vmem:[#allocation10 + $0x20] sm:$0xff]  }
 0x1e9   :  { %3325 = vmatprep.subr.bf16.mxu0 %v3819_v56 }
 0x1eb   :  { %3610 = vmatpush3.bf16.msra.mxu1 %v3821_v58  ;;  %v3838_v58 = vld [vmem:[#allocation10 + $0x18] sm:$0xff]  }
 0x1ec   :  { %3326 = vmatpush3.bf16.msra.mxu0 %v3820_v57  ;;  %3611 = vmatprep.subr.bf16.mxu1 %v4233_v0  ;;  %v3837_v57 = vld [vmem:[#allocation10 + $0x58] sm:$0xff]  }
 0x1ed   :  { %3327 = vmatprep.subr.bf16.mxu0 %v3822_v59  ;;  %v3839_v59 = vld [vmem:[#allocation9 + $0x18] sm:$0xff]  }
 0x1ef   :  { %3612 = vmatpush3.bf16.msra.mxu1 %v3824_v61  ;;  %v3840_v61 = vld [vmem:[#allocation10 + $0x50] sm:$0xff]  }
 0x1f0   :  { %3328 = vmatpush3.bf16.msra.mxu0 %v3823_v60  ;;  %3617 = vmatprep.subr.bf16.mxu1 %v4233_v0 }
 0x292   :  { %v3298_v14 = vpop.f32.mrf.mxu0  ;;  %v695_v15 = vpop.f32.mrf.mxu1 }
 0x293   :  { %v701_v16 = vadd.f32 %v695_v15, %v240_v13 }
 0x294   :  { %v3299_v18 = vpop.f32.mrf.mxu0  ;;  %v3595_v19 = vpop.f32.mrf.mxu1 }
 0x295   :  { %v3071_v20 = vmul.f32 -1.442695, %v701_v16  ;;  %v3300_v21 = vadd.f32 %v3299_v18, %v3298_v14 }
 0x296   :  { %v3301_v22 = vpop.f32.mrf.mxu0  ;;  %v698_v23 = vpop.f32.mrf.mxu1 }
 0x297   :  { %3977 = vpow2.f32 %v3071_v20  ;;  %v571_v24 = vadd.f32 %v3300_v21, %v4368_v17 }
 0x298   :  { %v3302_v25 = vpop.f32.mrf.mxu0  ;;  %v3596_v26 = vpop.f32.mrf.mxu1 }
 0x299   :  { %v3062_v29 = vmul.f32 -1.442695, %v571_v24  ;;  %3979 = vtanh.f32 %v571_v24 }
 0x29b   :  { %3981 = vpow2.f32 %v3062_v29 }
 0x29c   :  { %3983 = vtanh.f32 %v701_v16 }
 0x2a4   :  { %v3978_v33 = vpop.eup %3977 }
 0x2a5   :  { %v705_v34 = vadd.f32 1.0, %v3978_v33 }
 0x2a6   :  { %v3980_v35 = vpop.eup %3979 }
 0x2a7   :  { %3985 = vrcp.f32 %v705_v34  ;;  %585 = vrot.lane.b32.xlu0 %v3980_v35, %s4228_s10 }
 0x2a8   :  { %v3982_v39 = vpop.eup %3981 }
 0x2a9   :  { %v579_v40 = vadd.f32 1.0, %v3982_v39  ;;  %v3984_v41 = vpop.eup %3983  ;;  %v3825_v39 = vld [vmem:[#allocation10 + $0x78] sm:$0xff]  }
 0x2aa   :  { %3344 = vmatprep.subr.bf16.mxu0 %v3825_v39 }
 0x2ab   :  { %3987 = vrcp.f32 %v579_v40  ;;  %711 = vrot.lane.b32.xlu0 %v3984_v41, %s4228_s10  ;;  %v3827_v40 = vld [vmem:[#allocation9 + $0x38] sm:$0xff]  }
 0x2b4   :  { %v3986_v48 = vpop.eup %3985 }
 0x2b5   :  { %713 = vrot.lane.b32.xlu0 %v3986_v48, %s4236_s29 }
 0x2b8   :  { %v3988_v52 = vpop.eup %3987 }
 0x2b9   :  { %583 = vrot.lane.b32.xlu1 %v3988_v52, %s4237_s30 }
 0x2bd   :  { %709 = vrot.lane.b32.xlu1 %v3986_v48, %s4237_s30 }
 0x2c1   :  { %587 = vrot.lane.b32.xlu1 %v3988_v52, %s4236_s29 }
 0x319   :  { %v586_v62 = vpop.permute.xlu0 %585 }
 0x31a   :  { %v590_v1 = vmul.f32 %v3988_v52, %v586_v62  ;;  %v3833_v52 = vld [vmem:[#allocation9 + $0x28] sm:$0xff]   ;;  %v3841_v62 = vld [vmem:[#allocation10 + $0x10] sm:$0xff]  }
 0x31d   :  { %v712_v4 = vpop.permute.xlu0 %711 }
 0x31e   :  { %v716_v8 = vmul.f32 %v3986_v48, %v712_v4  ;;  %v3845_v4 = vld [vmem:[#allocation9 + $0x8] sm:$0xff]  }
 0x327   :  { %v714_v21 = vpop.permute.xlu0 %713 }
 0x32b   :  { %v584_v63 = vpop.permute.xlu1 %583 }
 0x32c   :  { %v589_v3 = vmul.f32 0.0, %v584_v63  ;;  %v3842_v63 = vld [vmem:[#allocation9 + $0x10] sm:$0xff]  }
 0x32e   :  { %v4385_v5 = vadd.f32 %v590_v1, %v589_v3  ;;  %v3843_v1 = vld [vmem:[#allocation10 + $0x48] sm:$0xff]  }
 0x32f   :  { %v710_v6 = vpop.permute.xlu1 %709  ;;  %v3844_v3 = vld [vmem:[#allocation10 + $0x8] sm:$0xff]  }
 0x330   :  { %3989 = vtanh.f32 %v4385_v5  ;;  %v715_v13 = vmul.f32 %v710_v6, %v4349_v2  ;;  %v245_v2 = vadd.f32 %v4332_v27, %v4337_v28  ;;  %v3826_v27 = vld [vmem:[#allocation10 + $0x38] sm:$0xff]   ;;  %v3846_v6 = vld [vmem:[#allocation10 + $0x40] sm:$0xff]  }
 0x332   :  { %v4389_v14 = vadd.f32 %v716_v8, %v715_v13  ;;  %v3847_v8 = vld [vmem:[#allocation10] sm:$0xff]  }
 0x333   :  { %v588_v16 = vpop.permute.xlu1 %587  ;;  %v3848_v13 = vld [vmem:[#allocation9] sm:$0xff]  }
 0x334   :  { %3991 = vtanh.f32 %v4389_v14 }
 0x33d   :  { %v3990_v15 = vpop.eup %3989 }
 0x33e   :  { %v4392_v18 = vmul.f32 %v3990_v15, %v588_v16 }
 0x340   :  { %v721_v19 = vpack.c.bf16 %v4392_v18, %v4392_v18 }
 0x341   :  { %v3992_v20 = vpop.eup %3991 }
 0x342   :  { %889 = vmatprep.mubr.bf16.mxu0 %v721_v19  ;;  %v719_v22 = vmul.f32 %v3992_v20, %v714_v21 }
 0x344   :  { %v720_v23 = vpack.c.bf16 %v719_v22, %v719_v22 }
 0x346   :  { %890 = vmatmul.mubr.bf16.vlgmr.msra.gmra.mxu0 %v720_v23  ;;  %3614 = vmatmul.mubr.bf16.vlgmr.msra.gmra.mxu1 %v720_v23 }
 0x347   :  { %3633 = vmatprep.mubr.msk.bf16.mxu1 %vm4234_vm0, %v4233_v0  ;;  %3618 = vmatpush3.bf16.msra.mxu1 %v3827_v40 }
 0x348   :  { %3345 = vmatpush3.bf16.msra.mxu0 %v3826_v27  ;;  %3619 = vmatprep.subr.bf16.mxu1 %v4233_v0 }
 0x349   :  { %3346 = vmatprep.subr.bf16.mxu0 %v3828_v44 }
 0x34b   :  { %3620 = vmatpush3.bf16.msra.mxu1 %v3830_v46 }
 0x34c   :  { %3347 = vmatpush3.bf16.msra.mxu0 %v3829_v45  ;;  %3621 = vmatprep.subr.bf16.mxu1 %v4233_v0 }
 0x34d   :  { %3348 = vmatprep.subr.bf16.mxu0 %v3831_v50 }
 0x34f   :  { %3622 = vmatpush3.bf16.msra.mxu1 %v3833_v52  ;;  %v3852_v52 = vld [vmem:[#allocation10 + $0x70] sm:$0xff]  }
 0x350   :  { %3349 = vmatpush3.bf16.msra.mxu0 %v3832_v51  ;;  %3623 = vmatprep.subr.bf16.mxu1 %v4233_v0 }
 0x351   :  { %3350 = vmatprep.subr.bf16.mxu0 %v3834_v53  ;;  %v3853_v53 = vld [vmem:[#allocation10 + $0x30] sm:$0xff]  }
 0x353   :  { %3624 = vmatpush3.bf16.msra.mxu1 %v3836_v55 }
 0x354   :  { %3351 = vmatpush3.bf16.msra.mxu0 %v3835_v54  ;;  %3625 = vmatprep.subr.bf16.mxu1 %v4233_v0  ;;  %v3854_v54 = vld [vmem:[#allocation9 + $0x30] sm:$0xff]  }
 0x355   :  { %3352 = vmatprep.subr.bf16.mxu0 %v3837_v57 }
 0x357   :  { %3626 = vmatpush3.bf16.msra.mxu1 %v3839_v59  ;;  %v3856_v59 = vld [vmem:[#allocation10 + $0x28] sm:$0xff]  }
 0x358   :  { %3353 = vmatpush3.bf16.msra.mxu0 %v3838_v58  ;;  %3627 = vmatprep.subr.bf16.mxu1 %v4233_v0  ;;  %v3855_v58 = vld [vmem:[#allocation10 + $0x68] sm:$0xff]  }
 0x359   :  { %3354 = vmatprep.subr.bf16.mxu0 %v3840_v61  ;;  %v3858_v61 = vld [vmem:[#allocation10 + $0x60] sm:$0xff]  }
 0x35b   :  { %3628 = vmatpush3.bf16.msra.mxu1 %v3842_v63  ;;  %v3860_v63 = vld [vmem:[#allocation9 + $0x20] sm:$0xff]  }
 0x35c   :  { %3355 = vmatpush3.bf16.msra.mxu0 %v3841_v62  ;;  %3629 = vmatprep.subr.bf16.mxu1 %v4233_v0  ;;  %v3859_v62 = vld [vmem:[#allocation10 + $0x20] sm:$0xff]  }
 0x35d   :  { %3356 = vmatprep.subr.bf16.mxu0 %v3843_v1 }
 0x35f   :  { %3630 = vmatpush3.bf16.msra.mxu1 %v3845_v4  ;;  %v3862_v4 = vld [vmem:[#allocation10 + $0x18] sm:$0xff]  }
 0x360   :  { %3357 = vmatpush3.bf16.msra.mxu0 %v3844_v3  ;;  %3631 = vmatprep.subr.bf16.mxu1 %v4233_v0  ;;  %v3861_v3 = vld [vmem:[#allocation10 + $0x58] sm:$0xff]  }
 0x361   :  { %3358 = vmatprep.subr.bf16.mxu0 %v3846_v6  ;;  %v3863_v6 = vld [vmem:[#allocation9 + $0x18] sm:$0xff]  }
 0x363   :  { %3632 = vmatpush3.bf16.msra.mxu1 %v3848_v13  ;;  %v3864_v13 = vld [vmem:[#allocation10 + $0x50] sm:$0xff]  }
 0x364   :  { %3359 = vmatpush3.bf16.msra.mxu0 %v3847_v8  ;;  %3637 = vmatprep.subr.bf16.mxu1 %v4233_v0 }
 0x406   :  { %v3329_v24 = vpop.f32.mrf.mxu0  ;;  %v1017_v25 = vpop.f32.mrf.mxu1 }
 0x407   :  { %v1023_v26 = vadd.f32 %v1017_v25, %v245_v2 }
 0x408   :  { %v3330_v29 = vpop.f32.mrf.mxu0  ;;  %v3615_v30 = vpop.f32.mrf.mxu1 }
 0x409   :  { %v3098_v31 = vmul.f32 -1.442695, %v1023_v26  ;;  %v3331_v32 = vadd.f32 %v3330_v29, %v3329_v24 }
 0x40a   :  { %v3332_v33 = vpop.f32.mrf.mxu0  ;;  %v1020_v34 = vpop.f32.mrf.mxu1 }
 0x40b   :  { %3993 = vpow2.f32 %v3098_v31  ;;  %v892_v35 = vadd.f32 %v3331_v32, %v4368_v17 }
 0x40c   :  { %v3333_v36 = vpop.f32.mrf.mxu0  ;;  %v3616_v37 = vpop.f32.mrf.mxu1 }
 0x40d   :  { %v3089_v38 = vmul.f32 -1.442695, %v892_v35  ;;  %3995 = vtanh.f32 %v892_v35 }
 0x40f   :  { %3997 = vpow2.f32 %v3089_v38 }
 0x410   :  { %3999 = vtanh.f32 %v1023_v26 }
 0x418   :  { %v3994_v41 = vpop.eup %3993 }
 0x419   :  { %v1027_v42 = vadd.f32 1.0, %v3994_v41 }
 0x41a   :  { %v3996_v43 = vpop.eup %3995 }
 0x41b   :  { %4001 = vrcp.f32 %v1027_v42  ;;  %906 = vrot.lane.b32.xlu0 %v3996_v43, %s4228_s10 }
 0x41c   :  { %v3998_v47 = vpop.eup %3997 }
 0x41d   :  { %v900_v48 = vadd.f32 1.0, %v3998_v47  ;;  %v4000_v49 = vpop.eup %3999  ;;  %v3849_v47 = vld [vmem:[#allocation10 + $0x78] sm:$0xff]  }
 0x41e   :  { %3375 = vmatprep.subr.bf16.mxu0 %v3849_v47 }
 0x41f   :  { %4003 = vrcp.f32 %v900_v48  ;;  %1033 = vrot.lane.b32.xlu0 %v4000_v49, %s4228_s10  ;;  %v3851_v48 = vld [vmem:[#allocation9 + $0x38] sm:$0xff]  }
 0x428   :  { %v4002_v56 = vpop.eup %4001 }
 0x429   :  { %1035 = vrot.lane.b32.xlu0 %v4002_v56, %s4236_s29 }
 0x42c   :  { %v4004_v60 = vpop.eup %4003 }
 0x42d   :  { %904 = vrot.lane.b32.xlu1 %v4004_v60, %s4237_s30 }
 0x431   :  { %1031 = vrot.lane.b32.xlu1 %v4002_v56, %s4237_s30 }
 0x435   :  { %908 = vrot.lane.b32.xlu1 %v4004_v60, %s4236_s29 }
 0x48d   :  { %v907_v15 = vpop.permute.xlu0 %906 }
 0x48e   :  { %v911_v19 = vmul.f32 %v4004_v60, %v907_v15  ;;  %v3857_v60 = vld [vmem:[#allocation9 + $0x28] sm:$0xff]   ;;  %v3865_v15 = vld [vmem:[#allocation10 + $0x10] sm:$0xff]  }
 0x491   :  { %v1034_v21 = vpop.permute.xlu0 %1033 }
 0x492   :  { %v1038_v2 = vmul.f32 %v4002_v56, %v1034_v21  ;;  %v3869_v21 = vld [vmem:[#allocation9 + $0x8] sm:$0xff]  }
 0x49b   :  { %v1036_v32 = vpop.permute.xlu0 %1035 }
 0x49f   :  { %v905_v16 = vpop.permute.xlu1 %904 }
 0x4a0   :  { %v910_v20 = vmul.f32 %v905_v16, %v4385_v5  ;;  %v3866_v16 = vld [vmem:[#allocation9 + $0x10] sm:$0xff]  }
 0x4a2   :  { %v4416_v22 = vadd.f32 %v911_v19, %v910_v20  ;;  %v3867_v19 = vld [vmem:[#allocation10 + $0x48] sm:$0xff]  }
 0x4a3   :  { %v1032_v23 = vpop.permute.xlu1 %1031  ;;  %v3868_v20 = vld [vmem:[#allocation10 + $0x8] sm:$0xff]  }
 0x4a4   :  { %4005 = vtanh.f32 %v4416_v22  ;;  %v1037_v24 = vmul.f32 %v1032_v23, %v4389_v14  ;;  %v248_v14 = vadd.f32 %v4354_v7, %v4337_v28  ;;  %v3850_v7 = vld [vmem:[#allocation10 + $0x38] sm:$0xff]   ;;  %v3870_v23 = vld [vmem:[#allocation10 + $0x40] sm:$0xff]  }
 0x4a6   :  { %v4420_v25 = vadd.f32 %v1038_v2, %v1037_v24  ;;  %v3871_v2 = vld [vmem:[#allocation10] sm:$0xff]  }
 0x4a7   :  { %v909_v29 = vpop.permute.xlu1 %908  ;;  %v3872_v24 = vld [vmem:[#allocation9] sm:$0xff]  }
 0x4a8   :  { %4007 = vtanh.f32 %v4420_v25 }
 0x4b1   :  { %v4006_v26 = vpop.eup %4005 }
 0x4b2   :  { %v4423_v30 = vmul.f32 %v4006_v26, %v909_v29 }
 0x4b4   :  { %v1043_v5 = vpack.c.bf16 %v4423_v30, %v4423_v30 }
 0x4b5   :  { %v4008_v31 = vpop.eup %4007 }
 0x4b6   :  { %1211 = vmatprep.mubr.bf16.mxu0 %v1043_v5  ;;  %v1041_v33 = vmul.f32 %v4008_v31, %v1036_v32 }
 0x4b8   :  { %v1042_v34 = vpack.c.bf16 %v1041_v33, %v1041_v33 }
 0x4ba   :  { %1212 = vmatmul.mubr.bf16.vlgmr.msra.gmra.mxu0 %v1042_v34  ;;  %3634 = vmatmul.mubr.bf16.vlgmr.msra.gmra.mxu1 %v1042_v34 }
 0x4bb   :  { %3653 = vmatprep.mubr.msk.bf16.mxu1 %vm4234_vm0, %v4233_v0  ;;  %3638 = vmatpush3.bf16.msra.mxu1 %v3851_v48 }
 0x4bc   :  { %3376 = vmatpush3.bf16.msra.mxu0 %v3850_v7  ;;  %3639 = vmatprep.subr.bf16.mxu1 %v4233_v0 }
 0x4bd   :  { %3377 = vmatprep.subr.bf16.mxu0 %v3852_v52 }
 0x4bf   :  { %3640 = vmatpush3.bf16.msra.mxu1 %v3854_v54 }
 0x4c0   :  { %3378 = vmatpush3.bf16.msra.mxu0 %v3853_v53  ;;  %3641 = vmatprep.subr.bf16.mxu1 %v4233_v0 }
 0x4c1   :  { %3379 = vmatprep.subr.bf16.mxu0 %v3855_v58 }
 0x4c3   :  { %3642 = vmatpush3.bf16.msra.mxu1 %v3857_v60  ;;  %v3878_v60 = vld [vmem:[#allocation9 + $0x30] sm:$0xff]  }
 0x4c4   :  { %3380 = vmatpush3.bf16.msra.mxu0 %v3856_v59  ;;  %3643 = vmatprep.subr.bf16.mxu1 %v4233_v0  ;;  %v3877_v59 = vld [vmem:[#allocation10 + $0x30] sm:$0xff]  }
 0x4c5   :  { %3381 = vmatprep.subr.bf16.mxu0 %v3858_v61 }
 0x4c7   :  { %3644 = vmatpush3.bf16.msra.mxu1 %v3860_v63 }
 0x4c8   :  { %3382 = vmatpush3.bf16.msra.mxu0 %v3859_v62  ;;  %3645 = vmatprep.subr.bf16.mxu1 %v4233_v0 }
 0x4c9   :  { %3383 = vmatprep.subr.bf16.mxu0 %v3861_v3  ;;  %v3880_v3 = vld [vmem:[#allocation10 + $0x28] sm:$0xff]  }
 0x4cb   :  { %3646 = vmatpush3.bf16.msra.mxu1 %v3863_v6  ;;  %v3882_v6 = vld [vmem:[#allocation10 + $0x60] sm:$0xff]  }
 0x4cc   :  { %3384 = vmatpush3.bf16.msra.mxu0 %v3862_v4  ;;  %3647 = vmatprep.subr.bf16.mxu1 %v4233_v0  ;;  %v3881_v4 = vld [vmem:[#allocation9 + $0x28] sm:$0xff]  }
 0x4cd   :  { %3385 = vmatprep.subr.bf16.mxu0 %v3864_v13  ;;  %v3884_v13 = vld [vmem:[#allocation9 + $0x20] sm:$0xff]  }
 0x4cf   :  { %3648 = vmatpush3.bf16.msra.mxu1 %v3866_v16  ;;  %v3885_v16 = vld [vmem:[#allocation10 + $0x58] sm:$0xff]  }
 0x4d0   :  { %3386 = vmatpush3.bf16.msra.mxu0 %v3865_v15  ;;  %3649 = vmatprep.subr.bf16.mxu1 %v4233_v0 }
 0x4d1   :  { %3387 = vmatprep.subr.bf16.mxu0 %v3867_v19  ;;  %v3886_v19 = vld [vmem:[#allocation10 + $0x18] sm:$0xff]  }
 0x4d3   :  { %3650 = vmatpush3.bf16.msra.mxu1 %v3869_v21 }
 0x4d4   :  { %3388 = vmatpush3.bf16.msra.mxu0 %v3868_v20  ;;  %3651 = vmatprep.subr.bf16.mxu1 %v4233_v0  ;;  %v3887_v20 = vld [vmem:[#allocation9 + $0x18] sm:$0xff]  }
 0x4d5   :  { %3389 = vmatprep.subr.bf16.mxu0 %v3870_v23  ;;  %v3888_v23 = vld [vmem:[#allocation10 + $0x50] sm:$0xff]  }
 0x4d7   :  { %3652 = vmatpush3.bf16.msra.mxu1 %v3872_v24  ;;  %v3890_v24 = vld [vmem:[#allocation9 + $0x10] sm:$0xff]  }
 0x4d8   :  { %3390 = vmatpush3.bf16.msra.mxu0 %v3871_v2  ;;  %3657 = vmatprep.subr.bf16.mxu1 %v4233_v0  ;;  %v3889_v2 = vld [vmem:[#allocation10 + $0x10] sm:$0xff]  }
 0x57a   :  { %v3360_v35 = vpop.f32.mrf.mxu0  ;;  %v1339_v36 = vpop.f32.mrf.mxu1 }
 0x57b   :  { %v1345_v37 = vadd.f32 %v1339_v36, %v248_v14 }
 0x57c   :  { %v3361_v38 = vpop.f32.mrf.mxu0  ;;  %v3635_v39 = vpop.f32.mrf.mxu1 }
 0x57d   :  { %v3125_v27 = vmul.f32 -1.442695, %v1345_v37  ;;  %v3362_v40 = vadd.f32 %v3361_v38, %v3360_v35 }
 0x57e   :  { %v3363_v41 = vpop.f32.mrf.mxu0  ;;  %v1342_v42 = vpop.f32.mrf.mxu1 }
 0x57f   :  { %4009 = vpow2.f32 %v3125_v27  ;;  %v1214_v43 = vadd.f32 %v3362_v40, %v4368_v17 }
 0x580   :  { %v3364_v44 = vpop.f32.mrf.mxu0  ;;  %v3636_v45 = vpop.f32.mrf.mxu1 }
 0x581   :  { %v3116_v46 = vmul.f32 -1.442695, %v1214_v43  ;;  %4011 = vtanh.f32 %v1214_v43 }
 0x583   :  { %4013 = vpow2.f32 %v3116_v46 }
 0x584   :  { %4015 = vtanh.f32 %v1345_v37 }
 0x58c   :  { %v4010_v49 = vpop.eup %4009 }
 0x58d   :  { %v1349_v50 = vadd.f32 1.0, %v4010_v49 }
 0x58e   :  { %v4012_v51 = vpop.eup %4011 }
 0x58f   :  { %4017 = vrcp.f32 %v1349_v50  ;;  %1228 = vrot.lane.b32.xlu0 %v4012_v51, %s4228_s10 }
 0x590   :  { %v4014_v55 = vpop.eup %4013 }
 0x591   :  { %v1222_v56 = vadd.f32 1.0, %v4014_v55  ;;  %v4016_v57 = vpop.eup %4015  ;;  %v3873_v55 = vld [vmem:[#allocation10 + $0x78] sm:$0xff]  }
 0x592   :  { %3406 = vmatprep.subr.bf16.mxu0 %v3873_v55 }
 0x593   :  { %4019 = vrcp.f32 %v1222_v56  ;;  %1355 = vrot.lane.b32.xlu0 %v4016_v57, %s4228_s10 }
 0x59c   :  { %v4018_v1 = vpop.eup %4017 }
 0x59d   :  { %1357 = vrot.lane.b32.xlu0 %v4018_v1, %s4236_s29 }
 0x5a0   :  { %v4020_v8 = vpop.eup %4019 }
 0x5a1   :  { %1226 = vrot.lane.b32.xlu1 %v4020_v8, %s4237_s30 }
 0x5a5   :  { %1353 = vrot.lane.b32.xlu1 %v4018_v1, %s4237_s30 }
 0x5a9   :  { %1230 = vrot.lane.b32.xlu1 %v4020_v8, %s4236_s29 }
 0x601   :  { %v1229_v26 = vpop.permute.xlu0 %1228 }
 0x602   :  { %v1233_v5 = vmul.f32 %v4020_v8, %v1229_v26  ;;  %v3883_v8 = vld [vmem:[#allocation10 + $0x20] sm:$0xff]   ;;  %v3891_v26 = vld [vmem:[#allocation10 + $0x48] sm:$0xff]  }
 0x605   :  { %v1356_v32 = vpop.permute.xlu0 %1355 }
 0x606   :  { %v1360_v14 = vmul.f32 %v4018_v1, %v1356_v32  ;;  %v3879_v1 = vld [vmem:[#allocation10 + $0x68] sm:$0xff]   ;;  %v3895_v32 = vld [vmem:[#allocation10] sm:$0xff]  }
 0x60f   :  { %v1358_v40 = vpop.permute.xlu0 %1357 }
 0x613   :  { %v1227_v29 = vpop.permute.xlu1 %1226 }
 0x614   :  { %v1232_v31 = vmul.f32 %v1227_v29, %v4416_v22  ;;  %v3892_v29 = vld [vmem:[#allocation10 + $0x8] sm:$0xff]  }
 0x616   :  { %v4447_v33 = vadd.f32 %v1233_v5, %v1232_v31  ;;  %v3893_v5 = vld [vmem:[#allocation9 + $0x8] sm:$0xff]   ;;  %v3894_v31 = vld [vmem:[#allocation10 + $0x40] sm:$0xff]  }
 0x617   :  { %v1354_v34 = vpop.permute.xlu1 %1353 }
 0x618   :  { %4021 = vtanh.f32 %v4447_v33  ;;  %v1359_v35 = vmul.f32 %v1354_v34, %v4420_v25  ;;  %v253_v25 = vadd.f32 %v4337_v28, %v4358_v10  ;;  %v3874_v28 = vld [vmem:[#allocation10 + $0x38] sm:$0xff]   ;;  %v3896_v34 = vld [vmem:[#allocation9] sm:$0xff]  }
 0x619   :  { %v3875_v10 = vld [vmem:[#allocation9 + $0x38] sm:$0xff]  }
 0x61a   :  { %v4451_v36 = vadd.f32 %v1360_v14, %v1359_v35 }
 0x61b   :  { %v1231_v38 = vpop.permute.xlu1 %1230 }
 0x61c   :  { %4023 = vtanh.f32 %v4451_v36 }
 0x625   :  { %v4022_v37 = vpop.eup %4021 }
 0x626   :  { %v4454_v39 = vmul.f32 %v4022_v37, %v1231_v38 }
 0x628   :  { %v1365_v22 = vpack.c.bf16 %v4454_v39, %v4454_v39 }
 0x629   :  { %v4024_v27 = vpop.eup %4023 }
 0x62a   :  { %1533 = vmatprep.mubr.bf16.mxu0 %v1365_v22  ;;  %v1363_v41 = vmul.f32 %v4024_v27, %v1358_v40 }
 0x62c   :  { %v1364_v42 = vpack.c.bf16 %v1363_v41, %v1363_v41 }
 0x62e   :  { %1534 = vmatmul.mubr.bf16.vlgmr.msra.gmra.mxu0 %v1364_v42  ;;  %3654 = vmatmul.mubr.bf16.vlgmr.msra.gmra.mxu1 %v1364_v42 }
 0x62f   :  { %3673 = vmatprep.mubr.msk.bf16.mxu1 %vm4234_vm0, %v4233_v0  ;;  %3658 = vmatpush3.bf16.msra.mxu1 %v3875_v10 }
 0x630   :  { %3407 = vmatpush3.bf16.msra.mxu0 %v3874_v28  ;;  %3659 = vmatprep.subr.bf16.mxu1 %v4233_v0 }
 0x633   :  { %3660 = vmatpush3.bf16.msra.mxu1 %v3878_v60  ;;  %v3897_v60 = vld [vmem:[#allocation10 + $0x78] sm:$0xff]  }
 0x634   :  { %3661 = vmatprep.subr.bf16.mxu1 %v4233_v0 }
 0x637   :  { %3662 = vmatpush3.bf16.msra.mxu1 %v3881_v4  ;;  %v3900_v4 = vld [vmem:[#allocation10 + $0x70] sm:$0xff]  }
 0x638   :  { %3663 = vmatprep.subr.bf16.mxu1 %v4233_v0 }
 0x63b   :  { %3664 = vmatpush3.bf16.msra.mxu1 %v3884_v13 }
 0x63c   :  { %3665 = vmatprep.subr.bf16.mxu1 %v4233_v0 }
 0x63f   :  { %3666 = vmatpush3.bf16.msra.mxu1 %v3887_v20  ;;  %v3904_v20 = vld [vmem:[#allocation10 + $0x28] sm:$0xff]  }
 0x640   :  { %3667 = vmatprep.subr.bf16.mxu1 %v4233_v0 }
 0x643   :  { %3668 = vmatpush3.bf16.msra.mxu1 %v3890_v24  ;;  %v3908_v24 = vld [vmem:[#allocation9 + $0x20] sm:$0xff]  }
 0x644   :  { %3669 = vmatprep.subr.bf16.mxu1 %v4233_v0 }
 0x647   :  { %3670 = vmatpush3.bf16.msra.mxu1 %v3893_v5  ;;  %v3910_v5 = vld [vmem:[#allocation10 + $0x18] sm:$0xff]  }
 0x648   :  { %3671 = vmatprep.subr.bf16.mxu1 %v4233_v0 }
 0x64b   :  { %3672 = vmatpush3.bf16.msra.mxu1 %v3896_v34  ;;  %v3912_v34 = vld [vmem:[#allocation10 + $0x50] sm:$0xff]  }
 0x64c   :  { %3677 = vmatprep.subr.bf16.mxu1 %v4233_v0 }
 0x6ee   :  { %v3391_v43 = vpop.f32.mrf.mxu0  ;;  %v1661_v44 = vpop.f32.mrf.mxu1 }
 0x6ef   :  { %v1667_v45 = vadd.f32 %v1661_v44, %v253_v25 }
 0x6f0   :  { %v3392_v46 = vpop.f32.mrf.mxu0  ;;  %v3655_v47 = vpop.f32.mrf.mxu1 }
 0x6f1   :  { %v3152_v7 = vmul.f32 -1.442695, %v1667_v45  ;;  %v3393_v48 = vadd.f32 %v3392_v46, %v3391_v43 }
 0x6f2   :  { %v3394_v49 = vpop.f32.mrf.mxu0  ;;  %v1664_v50 = vpop.f32.mrf.mxu1 }
 0x6f3   :  { %4025 = vpow2.f32 %v3152_v7  ;;  %v1536_v51 = vadd.f32 %v3393_v48, %v4368_v17  ;;  %v3876_v17 = vld [vmem:[#allocation10 + $0x70] sm:$0xff]  }
 0x6f4   :  { %v3395_v52 = vpop.f32.mrf.mxu0  ;;  %v3656_v53 = vpop.f32.mrf.mxu1  ;;  %3408 = vmatprep.subr.bf16.mxu0 %v3876_v17 }
 0x6f5   :  { %v3143_v54 = vmul.f32 -1.442695, %v1536_v51  ;;  %4027 = vtanh.f32 %v1536_v51  ;;  %3409 = vmatpush3.bf16.msra.mxu0 %v3877_v59  ;;  %v4501_v53 = vld [vmem:[%s4597_s5] ss:$0 sm:$0xff] }
 0x6f6   :  { %3410 = vmatprep.subr.bf16.mxu0 %v3879_v1 }
 0x6f7   :  { %4029 = vpow2.f32 %v3143_v54 }
 0x6f8   :  { %4031 = vtanh.f32 %v1667_v45 }
 0x6f9   :  { %3411 = vmatpush3.bf16.msra.mxu0 %v3880_v3 }
 0x6fa   :  { %3412 = vmatprep.subr.bf16.mxu0 %v3882_v6  ;;  %v3901_v6 = vld [vmem:[#allocation10 + $0x30] sm:$0xff]  }
 0x6fd   :  { %3413 = vmatpush3.bf16.msra.mxu0 %v3883_v8  ;;  %v3902_v8 = vld [vmem:[#allocation9 + $0x30] sm:$0xff]  }
 0x6fe   :  { %3414 = vmatprep.subr.bf16.mxu0 %v3885_v16 }
 0x700   :  { %v4026_v56 = vpop.eup %4025 }
 0x701   :  { %v1671_v57 = vadd.f32 1.0, %v4026_v56  ;;  %3415 = vmatpush3.bf16.msra.mxu0 %v3886_v19  ;;  %v3903_v19 = vld [vmem:[#allocation10 + $0x68] sm:$0xff]  }
 0x702   :  { %v4028_v58 = vpop.eup %4027  ;;  %3416 = vmatprep.subr.bf16.mxu0 %v3888_v23  ;;  %v3906_v23 = vld [vmem:[#allocation10 + $0x60] sm:$0xff]  }
 0x703   :  { %4033 = vrcp.f32 %v1671_v57  ;;  %1550 = vrot.lane.b32.xlu0 %v4028_v58, %s4228_s10 }
 0x704   :  { %v4030_v61 = vpop.eup %4029 }
 0x705   :  { %v1544_v62 = vadd.f32 1.0, %v4030_v61  ;;  %v4032_v63 = vpop.eup %4031  ;;  %3417 = vmatpush3.bf16.msra.mxu0 %v3889_v2  ;;  %v3898_v61 = vld [vmem:[#allocation10 + $0x38] sm:$0xff]   ;;  %v3907_v2 = vld [vmem:[#allocation10 + $0x20] sm:$0xff]  }
 0x706   :  { %3418 = vmatprep.subr.bf16.mxu0 %v3891_v26 }
 0x707   :  { %4035 = vrcp.f32 %v1544_v62  ;;  %1677 = vrot.lane.b32.xlu0 %v4032_v63, %s4228_s10  ;;  %v3899_v62 = vld [vmem:[#allocation9 + $0x38] sm:$0xff]  }
 0x709   :  { %3419 = vmatpush3.bf16.msra.mxu0 %v3892_v29  ;;  %v3909_v29 = vld [vmem:[#allocation10 + $0x58] sm:$0xff]  }
 0x70a   :  { %3420 = vmatprep.subr.bf16.mxu0 %v3894_v31  ;;  %v3911_v31 = vld [vmem:[#allocation9 + $0x18] sm:$0xff]  }
 0x70d   :  { %3421 = vmatpush3.bf16.msra.mxu0 %v3895_v32 }
 0x70e   :  { %3437 = vmatprep.subr.bf16.mxu0 %v3897_v60 }
 0x710   :  { %v4034_v15 = vpop.eup %4033 }
 0x711   :  { %1679 = vrot.lane.b32.xlu0 %v4034_v15, %s4236_s29 }
 0x714   :  { %v4036_v21 = vpop.eup %4035 }
 0x715   :  { %1548 = vrot.lane.b32.xlu1 %v4036_v21, %s4237_s30 }
 0x719   :  { %1675 = vrot.lane.b32.xlu1 %v4034_v15, %s4237_s30 }
 0x71d   :  { %1552 = vrot.lane.b32.xlu1 %v4036_v21, %s4236_s29 }
 0x775   :  { %v1551_v14 = vpop.permute.xlu0 %1550 }
 0x776   :  { %v1555_v37 = vmul.f32 %v4036_v21, %v1551_v14  ;;  %v3905_v21 = vld [vmem:[#allocation9 + $0x28] sm:$0xff]   ;;  %v3913_v14 = vld [vmem:[#allocation10 + $0x10] sm:$0xff]  }
 0x779   :  { %v1678_v22 = vpop.permute.xlu0 %1677 }
 0x77a   :  { %v1682_v41 = vmul.f32 %v4034_v15, %v1678_v22  ;;  %v3917_v22 = vld [vmem:[#allocation9 + $0x8] sm:$0xff]  }
 0x783   :  { %v1680_v47 = vpop.permute.xlu0 %1679 }
 0x787   :  { %v1549_v35 = vpop.permute.xlu1 %1548 }
 0x788   :  { %v1554_v38 = vmul.f32 %v1549_v35, %v4447_v33  ;;  %v3914_v35 = vld [vmem:[#allocation9 + $0x10] sm:$0xff]  }
 0x78a   :  { %v4478_v27 = vadd.f32 %v1555_v37, %v1554_v38  ;;  %v3915_v37 = vld [vmem:[#allocation10 + $0x48] sm:$0xff]  }
 0x78b   :  { %v1676_v40 = vpop.permute.xlu1 %1675  ;;  %v3916_v38 = vld [vmem:[#allocation10 + $0x8] sm:$0xff]  }
 0x78c   :  { %4037 = vtanh.f32 %v4478_v27  ;;  %v1681_v42 = vmul.f32 %v1676_v40, %v4451_v36  ;;  %v4494_v36 = vld [vmem:[%s4595_s3] ss:$0 sm:$0xff] }
 0x78d   :  { %v256_v49 = vadd.f32 %v4494_v36, %v4362_v12  ;;  %v3918_v40 = vld [vmem:[#allocation10 + $0x40] sm:$0xff]  }
 0x78e   :  { %v4482_v25 = vadd.f32 %v1682_v41, %v1681_v42  ;;  %v3919_v41 = vld [vmem:[#allocation10] sm:$0xff]  }
 0x78f   :  { %v1553_v44 = vpop.permute.xlu1 %1552  ;;  %v3920_v42 = vld [vmem:[#allocation9] sm:$0xff]  }
 0x790   :  { %4039 = vtanh.f32 %v4482_v25 }
 0x799   :  { %v4038_v43 = vpop.eup %4037 }
 0x79a   :  { %v4485_v45 = vmul.f32 %v4038_v43, %v1553_v44 }
 0x79c   :  { %v1687_v33 = vpack.c.bf16 %v4485_v45, %v4485_v45 }
 0x79d   :  { %v4040_v46 = vpop.eup %4039 }
 0x79e   :  { %1855 = vmatprep.mubr.bf16.mxu0 %v1687_v33  ;;  %v1685_v7 = vmul.f32 %v4040_v46, %v1680_v47 }
 0x7a0   :  { %v1686_v48 = vpack.c.bf16 %v1685_v7, %v1685_v7 }
 0x7a2   :  { %1856 = vmatmul.mubr.bf16.vlgmr.msra.gmra.mxu0 %v1686_v48  ;;  %3674 = vmatmul.mubr.bf16.vlgmr.msra.gmra.mxu1 %v1686_v48 }
 0x7a3   :  { %3693 = vmatprep.mubr.msk.bf16.mxu1 %vm4234_vm0, %v4233_v0  ;;  %3678 = vmatpush3.bf16.msra.mxu1 %v3899_v62 }
 0x7a4   :  { %3438 = vmatpush3.bf16.msra.mxu0 %v3898_v61  ;;  %3679 = vmatprep.subr.bf16.mxu1 %v4233_v0 }
 0x7a5   :  { %3439 = vmatprep.subr.bf16.mxu0 %v3900_v4 }
 0x7a7   :  { %3680 = vmatpush3.bf16.msra.mxu1 %v3902_v8 }
 0x7a8   :  { %3440 = vmatpush3.bf16.msra.mxu0 %v3901_v6  ;;  %3681 = vmatprep.subr.bf16.mxu1 %v4233_v0 }
 0x7a9   :  { %3441 = vmatprep.subr.bf16.mxu0 %v3903_v19 }
 0x7ab   :  { %3682 = vmatpush3.bf16.msra.mxu1 %v3905_v21  ;;  %v3924_v21 = vld [vmem:[#allocation10 + $0x70] sm:$0xff]  }
 0x7ac   :  { %3442 = vmatpush3.bf16.msra.mxu0 %v3904_v20  ;;  %3683 = vmatprep.subr.bf16.mxu1 %v4233_v0 }
 0x7ad   :  { %3443 = vmatprep.subr.bf16.mxu0 %v3906_v23  ;;  %v3925_v23 = vld [vmem:[#allocation9 + $0x30] sm:$0xff]  }
 0x7af   :  { %3684 = vmatpush3.bf16.msra.mxu1 %v3908_v24 }
 0x7b0   :  { %3444 = vmatpush3.bf16.msra.mxu0 %v3907_v2  ;;  %3685 = vmatprep.subr.bf16.mxu1 %v4233_v0  ;;  %v3926_v2 = vld [vmem:[#allocation10 + $0x30] sm:$0xff]  }
 0x7b1   :  { %3445 = vmatprep.subr.bf16.mxu0 %v3909_v29 }
 0x7b3   :  { %3686 = vmatpush3.bf16.msra.mxu1 %v3911_v31  ;;  %v3928_v31 = vld [vmem:[#allocation9 + $0x28] sm:$0xff]  }
 0x7b4   :  { %3446 = vmatpush3.bf16.msra.mxu0 %v3910_v5  ;;  %3687 = vmatprep.subr.bf16.mxu1 %v4233_v0  ;;  %v3927_v5 = vld [vmem:[#allocation10 + $0x68] sm:$0xff]  }
 0x7b5   :  { %3447 = vmatprep.subr.bf16.mxu0 %v3912_v34  ;;  %v3930_v34 = vld [vmem:[#allocation10 + $0x60] sm:$0xff]  }
 0x7b7   :  { %3688 = vmatpush3.bf16.msra.mxu1 %v3914_v35  ;;  %v3932_v35 = vld [vmem:[#allocation10 + $0x20] sm:$0xff]  }
 0x7b8   :  { %3448 = vmatpush3.bf16.msra.mxu0 %v3913_v14  ;;  %3689 = vmatprep.subr.bf16.mxu1 %v4233_v0  ;;  %v3931_v14 = vld [vmem:[#allocation9 + $0x20] sm:$0xff]  }
 0x7b9   :  { %3449 = vmatprep.subr.bf16.mxu0 %v3915_v37 }
 0x7bb   :  { %3690 = vmatpush3.bf16.msra.mxu1 %v3917_v22  ;;  %v3934_v22 = vld [vmem:[#allocation9 + $0x18] sm:$0xff]  }
 0x7bc   :  { %3450 = vmatpush3.bf16.msra.mxu0 %v3916_v38  ;;  %3691 = vmatprep.subr.bf16.mxu1 %v4233_v0  ;;  %v3933_v38 = vld [vmem:[#allocation10 + $0x58] sm:$0xff]  }
 0x7bd   :  { %3451 = vmatprep.subr.bf16.mxu0 %v3918_v40  ;;  %v3935_v40 = vld [vmem:[#allocation10 + $0x18] sm:$0xff]  }
 0x7bf   :  { %3692 = vmatpush3.bf16.msra.mxu1 %v3920_v42  ;;  %v3936_v42 = vld [vmem:[#allocation10 + $0x50] sm:$0xff]  }
 0x7c0   :  { %3452 = vmatpush3.bf16.msra.mxu0 %v3919_v41  ;;  %3697 = vmatprep.subr.bf16.mxu1 %v4233_v0 }
 0x862   :  { %v3422_v50 = vpop.f32.mrf.mxu0  ;;  %v1983_v51 = vpop.f32.mrf.mxu1 }
 0x863   :  { %v1989_v52 = vadd.f32 %v1983_v51, %v256_v49 }
 0x864   :  { %v3423_v54 = vpop.f32.mrf.mxu0  ;;  %v3675_v55 = vpop.f32.mrf.mxu1 }
 0x865   :  { %v3179_v28 = vmul.f32 -1.442695, %v1989_v52  ;;  %v3424_v10 = vadd.f32 %v3423_v54, %v3422_v50 }
 0x866   :  { %v3425_v56 = vpop.f32.mrf.mxu0  ;;  %v1986_v57 = vpop.f32.mrf.mxu1 }
 0x867   :  { %4041 = vpow2.f32 %v3179_v28  ;;  %v1858_v58 = vadd.f32 %v3424_v10, %v4501_v53 }
 0x868   :  { %v3426_v17 = vpop.f32.mrf.mxu0  ;;  %v3676_v59 = vpop.f32.mrf.mxu1 }
 0x869   :  { %v3170_v12 = vmul.f32 -1.442695, %v1858_v58  ;;  %4043 = vtanh.f32 %v1858_v58 }
 0x86b   :  { %4045 = vpow2.f32 %v3170_v12 }
 0x86c   :  { %4047 = vtanh.f32 %v1989_v52 }
 0x874   :  { %v4042_v63 = vpop.eup %4041 }
 0x875   :  { %v1993_v1 = vadd.f32 1.0, %v4042_v63 }
 0x876   :  { %v4044_v3 = vpop.eup %4043 }
 0x877   :  { %4049 = vrcp.f32 %v1993_v1  ;;  %1872 = vrot.lane.b32.xlu0 %v4044_v3, %s4228_s10 }
 0x878   :  { %v4046_v13 = vpop.eup %4045 }
 0x879   :  { %v1866_v15 = vadd.f32 1.0, %v4046_v13  ;;  %v4048_v16 = vpop.eup %4047  ;;  %v3921_v13 = vld [vmem:[#allocation10 + $0x78] sm:$0xff]  }
 0x87a   :  { %3468 = vmatprep.subr.bf16.mxu0 %v3921_v13  ;;  %v3950_v13 = vld [vmem:[#allocation12 + $0x10] sm:$0xff]  }
 0x87b   :  { %4051 = vrcp.f32 %v1866_v15  ;;  %1999 = vrot.lane.b32.xlu0 %v4048_v16, %s4228_s10  ;;  %v3923_v15 = vld [vmem:[#allocation10 + $0x38] sm:$0xff]  }
 0x884   :  { %v4050_v26 = vpop.eup %4049 }
 0x885   :  { %2001 = vrot.lane.b32.xlu0 %v4050_v26, %s4236_s29 }
 0x888   :  { %v4052_v32 = vpop.eup %4051 }
 0x889   :  { %1870 = vrot.lane.b32.xlu1 %v4052_v32, %s4237_s30 }
 0x88d   :  { %1997 = vrot.lane.b32.xlu1 %v4050_v26, %s4237_s30 }
 0x891   :  { %1874 = vrot.lane.b32.xlu1 %v4052_v32, %s4236_s29 }
 0x8e9   :  { %v1873_v43 = vpop.permute.xlu0 %1872 }
 0x8ea   :  { %v1877_v33 = vmul.f32 %v4052_v32, %v1873_v43  ;;  %v3929_v32 = vld [vmem:[#allocation10 + $0x28] sm:$0xff]   ;;  %v3937_v43 = vld [vmem:[#allocation9 + $0x10] sm:$0xff]  }
 0x8ed   :  { %v2000_v47 = vpop.permute.xlu0 %1999 }
 0x8ee   :  { %v2004_v49 = vmul.f32 %v4050_v26, %v2000_v47  ;;  %v3941_v47 = vld [vmem:[#allocation10 + $0x8] sm:$0xff]  }
 0x8f7   :  { %v2002_v10 = vpop.permute.xlu0 %2001 }
 0x8fb   :  { %v1871_v44 = vpop.permute.xlu1 %1870 }
 0x8fc   :  { %v1876_v46 = vmul.f32 %v1871_v44, %v4478_v27  ;;  %v3938_v44 = vld [vmem:[#allocation10 + $0x10] sm:$0xff]  }
 0x8fe   :  { %v4519_v7 = vadd.f32 %v1877_v33, %v1876_v46  ;;  %v3939_v33 = vld [vmem:[#allocation10 + $0x48] sm:$0xff]  }
 0x8ff   :  { %v1998_v48 = vpop.permute.xlu1 %1997  ;;  %v3940_v46 = vld [vmem:[#allocation9 + $0x8] sm:$0xff]  }
 0x900   :  { %4053 = vtanh.f32 %v4519_v7  ;;  %v2003_v50 = vmul.f32 %v1998_v48, %v4482_v25  ;;  %v261_v25 = vadd.f32 %v4494_v36, %v4356_v9  ;;  %v3922_v9 = vld [vmem:[#allocation9 + $0x38] sm:$0xff]   ;;  %v3942_v48 = vld [vmem:[#allocation10 + $0x40] sm:$0xff]  }
 0x902   :  { %v4523_v51 = vadd.f32 %v2004_v49, %v2003_v50  ;;  %v3943_v49 = vld [vmem:[#allocation9] sm:$0xff]  }
 0x903   :  { %v1875_v54 = vpop.permute.xlu1 %1874  ;;  %v3944_v50 = vld [vmem:[#allocation10] sm:$0xff]  }
 0x904   :  { %4055 = vtanh.f32 %v4523_v51 }
 0x90d   :  { %v4054_v52 = vpop.eup %4053 }
 0x90e   :  { %v4526_v55 = vmul.f32 %v4054_v52, %v1875_v54  ;;  %v3945_v52 = vld [vmem:[#allocation12 + $0x38] sm:$0xff]  }
 0x910   :  { %v2009_v27 = vpack.c.bf16 %v4526_v55, %v4526_v55 }
 0x911   :  { %v4056_v28 = vpop.eup %4055 }
 0x912   :  { %2177 = vmatprep.mubr.bf16.mxu0 %v2009_v27  ;;  %v2007_v56 = vmul.f32 %v4056_v28, %v2002_v10 }
 0x914   :  { %v2008_v57 = vpack.c.bf16 %v2007_v56, %v2007_v56 }
 0x916   :  { %2178 = vmatmul.mubr.bf16.vlgmr.msra.gmra.mxu0 %v2008_v57  ;;  %3694 = vmatmul.mubr.bf16.vlgmr.msra.gmra.mxu1 %v2008_v57 }
 0x917   :  { %3713 = vmatprep.mubr.msk.bf16.mxu1 %vm4234_vm0, %v4233_v0  ;;  %3698 = vmatpush3.bf16.msra.mxu1 %v3922_v9  ;;  %v3951_v9 = vld [vmem:[#allocation12 + $0x8] sm:$0xff]  }
 0x918   :  { %3469 = vmatpush3.bf16.msra.mxu0 %v3923_v15  ;;  %3699 = vmatprep.subr.bf16.mxu1 %v4233_v0 }
 0x919   :  { %3470 = vmatprep.subr.bf16.mxu0 %v3924_v21 }
 0x91b   :  { %3700 = vmatpush3.bf16.msra.mxu1 %v3925_v23 }
 0x91c   :  { %3471 = vmatpush3.bf16.msra.mxu0 %v3926_v2  ;;  %3701 = vmatprep.subr.bf16.mxu1 %v4233_v0 }
 0x91d   :  { %3472 = vmatprep.subr.bf16.mxu0 %v3927_v5 }
 0x91f   :  { %3702 = vmatpush3.bf16.msra.mxu1 %v3928_v31 }
 0x920   :  { %3473 = vmatpush3.bf16.msra.mxu0 %v3929_v32  ;;  %3703 = vmatprep.subr.bf16.mxu1 %v4233_v0  ;;  %v3953_v32 = vld [vmem:[#allocation10 + $0x78] sm:$0xff]  }
 0x921   :  { %3474 = vmatprep.subr.bf16.mxu0 %v3930_v34 }
 0x923   :  { %3704 = vmatpush3.bf16.msra.mxu1 %v3931_v14 }
 0x924   :  { %3475 = vmatpush3.bf16.msra.mxu0 %v3932_v35  ;;  %3705 = vmatprep.subr.bf16.mxu1 %v4233_v0  ;;  %v3955_v35 = vld [vmem:[#allocation10 + $0x70] sm:$0xff]  }
 0x925   :  { %3476 = vmatprep.subr.bf16.mxu0 %v3933_v38 }
 0x927   :  { %3706 = vmatpush3.bf16.msra.mxu1 %v3934_v22 }
 0x928   :  { %3477 = vmatpush3.bf16.msra.mxu0 %v3935_v40  ;;  %3707 = vmatprep.subr.bf16.mxu1 %v4233_v0 }
 0x929   :  { %3478 = vmatprep.subr.bf16.mxu0 %v3936_v42  ;;  %v3958_v42 = vld [vmem:[#allocation10 + $0x28] sm:$0xff]  }
 0x92b   :  { %3708 = vmatpush3.bf16.msra.mxu1 %v3937_v43  ;;  %v4569_v43 = vld [vmem:[%s4599_s7] ss:$0 sm:$0xff]  ;;  %s4239_s7 = smov [#allocation13]  }
 0x92c   :  { %3479 = vmatpush3.bf16.msra.mxu0 %v3938_v44  ;;  %3709 = vmatprep.subr.bf16.mxu1 %v4233_v0  ;;  %v3959_v44 = vld [vmem:[#allocation10 + $0x60] sm:$0xff]  }
 0x92d   :  { %3480 = vmatprep.subr.bf16.mxu0 %v3939_v33 }
 0x92f   :  { %3710 = vmatpush3.bf16.msra.mxu1 %v3940_v46  ;;  %v3960_v46 = vld [vmem:[#allocation10 + $0x20] sm:$0xff]  }
 0x930   :  { %3481 = vmatpush3.bf16.msra.mxu0 %v3941_v47  ;;  %3711 = vmatprep.subr.bf16.mxu1 %v4233_v0 }
 0x931   :  { %3482 = vmatprep.subr.bf16.mxu0 %v3942_v48 }
 0x933   :  { %3712 = vmatpush3.bf16.msra.mxu1 %v3943_v49 }
 0x934   :  { %3483 = vmatpush3.bf16.msra.mxu0 %v3944_v50  ;;  %3717 = vmatprep.subr.bf16.mxu1 %v3945_v52 }
 0x935   :  { %3499 = vmatprep.subr.bf16.mxu0 %v3953_v32 }
 0x9d6   :  { %v3453_v58 = vpop.f32.mrf.mxu0  ;;  %v2305_v17 = vpop.f32.mrf.mxu1 }
 0x9d7   :  { %v2311_v59 = vadd.f32 %v2305_v17, %v261_v25 }
 0x9d8   :  { %v3454_v12 = vpop.f32.mrf.mxu0  ;;  %v3695_v60 = vpop.f32.mrf.mxu1 }
 0x9d9   :  { %v3206_v61 = vmul.f32 -1.442695, %v2311_v59  ;;  %v3455_v62 = vadd.f32 %v3454_v12, %v3453_v58 }
 0x9da   :  { %v3456_v63 = vpop.f32.mrf.mxu0  ;;  %v2308_v1 = vpop.f32.mrf.mxu1 }
 0x9db   :  { %4057 = vpow2.f32 %v3206_v61  ;;  %v2180_v3 = vadd.f32 %v3455_v62, %v4501_v53 }
 0x9dc   :  { %v3457_v4 = vpop.f32.mrf.mxu0  ;;  %v3696_v6 = vpop.f32.mrf.mxu1 }
 0x9dd   :  { %v3197_v8 = vmul.f32 -1.442695, %v2180_v3  ;;  %4059 = vtanh.f32 %v2180_v3  ;;  %v3946_v3 = vld [vmem:[#allocation12 + $0x30] sm:$0xff]   ;;  %v2856_v4 = vpack.c.bf16 %v4423_v30, %v4392_v18  ;;  %v3948_v6 = vld [vmem:[#allocation12 + $0x20] sm:$0xff]   ;;  %v2857_v30 = vpack.c.bf16 %v4485_v45, %v4454_v39 }
 0x9de   :  { %v3952_v18 = vld [vmem:[#allocation12] sm:$0xff]  }
 0x9df   :  { %4061 = vpow2.f32 %v3197_v8  ;;  %v3949_v8 = vld [vmem:[#allocation12 + $0x18] sm:$0xff]  }
 0x9e0   :  { %4063 = vtanh.f32 %v2311_v59 }
 0x9e8   :  { %v4058_v16 = vpop.eup %4057 }
 0x9e9   :  { %v2315_v19 = vadd.f32 1.0, %v4058_v16  ;;  %v264_v16 = vadd.f32 %v4494_v36, %v4360_v11  ;;  %v3954_v11 = vld [vmem:[#allocation10 + $0x38] sm:$0xff]  }
 0x9ea   :  { %v4060_v20 = vpop.eup %4059 }
 0x9eb   :  { %4065 = vrcp.f32 %v2315_v19  ;;  %2194 = vrot.lane.b32.xlu0 %v4060_v20, %s4228_s10 }
 0x9ec   :  { %v4062_v24 = vpop.eup %4061 }
 0x9ed   :  { %v2188_v26 = vadd.f32 1.0, %v4062_v24  ;;  %v4064_v29 = vpop.eup %4063 }
 0x9ef   :  { %4067 = vrcp.f32 %v2188_v26  ;;  %2321 = vrot.lane.b32.xlu0 %v4064_v29, %s4228_s10 }
 0x9f8   :  { %v4066_v37 = vpop.eup %4065 }
 0x9f9   :  { %2323 = vrot.lane.b32.xlu0 %v4066_v37, %s4236_s29 }
 0x9fc   :  { %v4068_v41 = vpop.eup %4067 }
 0x9fd   :  { %2192 = vrot.lane.b32.xlu1 %v4068_v41, %s4237_s30 }
 0xa01   :  { %2319 = vrot.lane.b32.xlu1 %v4066_v37, %s4237_s30 }
 0xa05   :  { %2196 = vrot.lane.b32.xlu1 %v4068_v41, %s4236_s29 }
 0xa5d   :  { %v2195_v54 = vpop.permute.xlu0 %2194 }
 0xa5e   :  { %v2199_v28 = vmul.f32 %v4068_v41, %v2195_v54  ;;  %v3957_v41 = vld [vmem:[#allocation10 + $0x68] sm:$0xff]  }
 0xa61   :  { %v2322_v56 = vpop.permute.xlu0 %2321 }
 0xa62   :  { %v2326_v0 = vmul.f32 %v4066_v37, %v2322_v56  ;;  %v3956_v37 = vld [vmem:[#allocation10 + $0x30] sm:$0xff]  }
 0xa6b   :  { %v2324_v63 = vpop.permute.xlu0 %2323 }
 0xa6f   :  { %v2193_v27 = vpop.permute.xlu1 %2192 }
 0xa70   :  { %v2198_v10 = vmul.f32 %v2193_v27, %v4519_v7  ;;  %v3962_v27 = vld [vmem:[#allocation10 + $0x18] sm:$0xff]  }
 0xa72   :  { %v4549_v57 = vadd.f32 %v2199_v28, %v2198_v10 }
 0xa73   :  { %v2320_v25 = vpop.permute.xlu1 %2319 }
 0xa74   :  { %4069 = vtanh.f32 %v4549_v57  ;;  %v2325_v58 = vmul.f32 %v2320_v25, %v4523_v51  ;;  %v3947_v51 = vld [vmem:[#allocation12 + $0x28] sm:$0xff]  }
 0xa76   :  { %v4553_v17 = vadd.f32 %v2326_v0, %v2325_v58  ;;  %v3963_v0 = vld [vmem:[#allocation10 + $0x50] sm:$0xff]  }
 0xa77   :  { %v2197_v12 = vpop.permute.xlu1 %2196  ;;  %v3964_v58 = vld [vmem:[#allocation10 + $0x10] sm:$0xff]  }
 0xa78   :  { %4071 = vtanh.f32 %v4553_v17 }
 0xa81   :  { %v4070_v59 = vpop.eup %4069 }
 0xa82   :  { %v2202_v60 = vmul.f32 %v4070_v59, %v2197_v12  ;;  %v3965_v59 = vld [vmem:[#allocation10 + $0x48] sm:$0xff]  }
 0xa83   :  { %v3966_v12 = vld [vmem:[#allocation10 + $0x8] sm:$0xff]  }
 0xa84   :  { %v2331_v61 = vpack.c.bf16 %v2202_v60, %v2202_v60  ;;  %v2858_v15 = vpack.c.bf16 %v2202_v60, %v4526_v55  ;;  %v3967_v60 = vld [vmem:[#allocation10 + $0x40] sm:$0xff]  }
 0xa85   :  { %v4072_v62 = vpop.eup %4071 }
 0xa86   :  { %2499 = vmatprep.mubr.bf16.mxu0 %v2331_v61  ;;  %v2329_v7 = vmul.f32 %v4072_v62, %v2324_v63  ;;  %v3968_v61 = vld [vmem:[#allocation10] sm:$0xff]  }
 0xa88   :  { %v2330_v1 = vpack.c.bf16 %v2329_v7, %v2329_v7 }
 0xa8a   :  { %2500 = vmatmul.mubr.bf16.vlgmr.msra.gmra.mxu0 %v2330_v1  ;;  %3714 = vmatmul.mubr.bf16.vlgmr.msra.gmra.mxu1 %v2330_v1 }
 0xa8b   :  { %3718 = vmatpush3.bf16.msra.mxu1 %v3945_v52  ;;  %3733 = vmatprep.mubr.bf16.mxu1 %v2856_v4  ;;  %v3961_v52 = vld [vmem:[#allocation10 + $0x58] sm:$0xff]  }
 0xa8c   :  { %3719 = vmatprep.subr.bf16.mxu1 %v3946_v3  ;;  %3500 = vmatpush3.bf16.msra.mxu0 %v3954_v11 }
 0xa8d   :  { %3501 = vmatprep.subr.bf16.mxu0 %v3955_v35 }
 0xa8f   :  { %3720 = vmatpush3.bf16.msra.mxu1 %v3946_v3 }
 0xa90   :  { %3721 = vmatprep.subr.bf16.mxu1 %v3947_v51  ;;  %3502 = vmatpush3.bf16.msra.mxu0 %v3956_v37 }
 0xa91   :  { %3503 = vmatprep.subr.bf16.mxu0 %v3957_v41 }
 0xa93   :  { %3722 = vmatpush3.bf16.msra.mxu1 %v3947_v51 }
 0xa94   :  { %3723 = vmatprep.subr.bf16.mxu1 %v3948_v6  ;;  %3504 = vmatpush3.bf16.msra.mxu0 %v3958_v42 }
 0xa95   :  { %3505 = vmatprep.subr.bf16.mxu0 %v3959_v44 }
 0xa97   :  { %3724 = vmatpush3.bf16.msra.mxu1 %v3948_v6 }
 0xa98   :  { %3725 = vmatprep.subr.bf16.mxu1 %v3949_v8  ;;  %3506 = vmatpush3.bf16.msra.mxu0 %v3960_v46 }
 0xa99   :  { %3507 = vmatprep.subr.bf16.mxu0 %v3961_v52 }
 0xa9b   :  { %3726 = vmatpush3.bf16.msra.mxu1 %v3949_v8 }
 0xa9c   :  { %3727 = vmatprep.subr.bf16.mxu1 %v3950_v13  ;;  %3508 = vmatpush3.bf16.msra.mxu0 %v3962_v27 }
 0xa9d   :  { %3509 = vmatprep.subr.bf16.mxu0 %v3963_v0 }
 0xa9f   :  { %3728 = vmatpush3.bf16.msra.mxu1 %v3950_v13 }
 0xaa0   :  { %3729 = vmatprep.subr.bf16.mxu1 %v3951_v9  ;;  %3510 = vmatpush3.bf16.msra.mxu0 %v3964_v58 }
 0xaa1   :  { %3511 = vmatprep.subr.bf16.mxu0 %v3965_v59 }
 0xaa3   :  { %3730 = vmatpush3.bf16.msra.mxu1 %v3951_v9 }
 0xaa4   :  { %3731 = vmatprep.subr.bf16.mxu1 %v3952_v18  ;;  %3512 = vmatpush3.bf16.msra.mxu0 %v3966_v12 }
 0xaa5   :  { %3513 = vmatprep.subr.bf16.mxu0 %v3967_v60 }
 0xaa7   :  { %3732 = vmatpush3.bf16.msra.mxu1 %v3952_v18 }
 0xaa8   :  { %3514 = vmatpush3.bf16.msra.mxu0 %v3968_v61 }
 0xaaa   :  { %3734 = vmatmul.mubr.bf16.vlgmr.msra.gmra.mxu1 %v2857_v30 }
 0xaab   :  { %3737 = vmatprep.mubr.bf16.mxu1 %v2858_v15 }
 0xb4a   :  { %v3484_v19 = vpop.f32.mrf.mxu0  ;;  %v2627_v20 = vpop.f32.mrf.mxu1 }
 0xb4b   :  { %v2633_v21 = vadd.f32 %v2627_v20, %v264_v16 }
 0xb4c   :  { %v3485_v23 = vpop.f32.mrf.mxu0  ;;  %v3715_v2 = vpop.f32.mrf.mxu1 }
 0xb4d   :  { %v3233_v24 = vmul.f32 -1.442695, %v2633_v21  ;;  %v3486_v26 = vadd.f32 %v3485_v23, %v3484_v19 }
 0xb4e   :  { %v3487_v29 = vpop.f32.mrf.mxu0  ;;  %v2630_v5 = vpop.f32.mrf.mxu1 }
 0xb4f   :  { %4073 = vpow2.f32 %v3233_v24  ;;  %v2502_v31 = vadd.f32 %v3486_v26, %v4501_v53 }
 0xb50   :  { %v3488_v39 = vpop.f32.mrf.mxu0  ;;  %v3716_v45 = vpop.f32.mrf.mxu1 }
 0xb51   :  { %v3224_v55 = vmul.f32 -1.442695, %v2502_v31  ;;  %4075 = vtanh.f32 %v2502_v31 }
 0xb53   :  { %4077 = vpow2.f32 %v3224_v55 }
 0xb54   :  { %4079 = vtanh.f32 %v2633_v21 }
 0xb5c   :  { %v4074_v36 = vpop.eup %4073 }
 0xb5d   :  { %v2637_v34 = vadd.f32 1.0, %v4074_v36 }
 0xb5e   :  { %v4076_v14 = vpop.eup %4075 }
 0xb5f   :  { %4081 = vrcp.f32 %v2637_v34  ;;  %2516 = vrot.lane.b32.xlu0 %v4076_v14, %s4228_s10 }
 0xb60   :  { %v4078_v38 = vpop.eup %4077 }
 0xb61   :  { %v2510_v22 = vadd.f32 1.0, %v4078_v38  ;;  %v4080_v40 = vpop.eup %4079 }
 0xb63   :  { %4083 = vrcp.f32 %v2510_v22  ;;  %2643 = vrot.lane.b32.xlu0 %v4080_v40, %s4228_s10 }
 0xb6a   :  { %v3735_v33 = vpop.f32.mrf.mxu1 }
 0xb6b   :  { %v2974_v47 = vadd.f32 %v3735_v33, %v4569_v43 }
 0xb6c   :  { %v4082_v48 = vpop.eup %4081  ;;  %v2965_v49 = vpop.f32.mrf.mxu1 }
 0xb6d   :  { %2998 = vst [vmem:[#allocation13 + $0x10] sm:$0xff] %v2974_v47  ;;  %v2966_v50 = vadd.f32 %v4569_v43, %v2965_v49  ;;  %2645 = vrot.lane.b32.xlu0 %v4082_v48, %s4236_s29 }
 0xb6e   :  { %v3736_v54 = vpop.f32.mrf.mxu1 }
 0xb6f   :  { %2996 = vst [vmem:[#allocation13] sm:$0xff] %v2966_v50  ;;  %v2977_v28 = vadd.f32 %v3736_v54, %v4569_v43 }
 0xb70   :  { %v4084_v10 = vpop.eup %4083  ;;  %v2968_v56 = vpop.f32.mrf.mxu1 }
 0xb71   :  { %2999 = vst [vmem:[#allocation13 + $0x18] sm:$0xff] %v2977_v28  ;;  %v2969_v25 = vadd.f32 %v4569_v43, %v2968_v56  ;;  %2514 = vrot.lane.b32.xlu1 %v4084_v10, %s4237_s30 }
 0xb73   :  { %2997 = vst [vmem:[#allocation13 + $0x8] sm:$0xff] %v2969_v25 }
 0xb75   :  { %2641 = vrot.lane.b32.xlu1 %v4082_v48, %s4237_s30 }
 0xb79   :  { %2518 = vrot.lane.b32.xlu1 %v4084_v10, %s4236_s29 }
 0xbd1   :  { %v2517_v62 = vpop.permute.xlu0 %2516 }
 0xbd2   :  { %v2521_v7 = vmul.f32 %v4084_v10, %v2517_v62 }
 0xbd5   :  { %v2644_v3 = vpop.permute.xlu0 %2643 }
 0xbd6   :  { %v2648_v6 = vmul.f32 %v4082_v48, %v2644_v3 }
 0xbdf   :  { %v2646_v19 = vpop.permute.xlu0 %2645 }
 0xbe3   :  { %v2515_v63 = vpop.permute.xlu1 %2514 }
 0xbe4   :  { %v2520_v1 = vmul.f32 %v2515_v63, %v4549_v57 }
 0xbe6   :  { %v2522_v4 = vadd.f32 %v2521_v7, %v2520_v1 }
 0xbe7   :  { %v2642_v51 = vpop.permute.xlu1 %2641 }
 0xbe8   :  { %4085 = vtanh.f32 %v2522_v4  ;;  %v2647_v8 = vmul.f32 %v2642_v51, %v4553_v17 }
 0xbea   :  { %v2649_v13 = vadd.f32 %v2648_v6, %v2647_v8 }
 0xbeb   :  { %v2519_v18 = vpop.permute.xlu1 %2518 }
 0xbec   :  { %4087 = vtanh.f32 %v2649_v13 }
 0xbf5   :  { %v4086_v9 = vpop.eup %4085 }
 0xbf6   :  { %v2524_v30 = vmul.f32 %v4086_v9, %v2519_v18 }
 0xbf8   :  { %v2653_v15 = vpack.c.bf16 %v2524_v30, %v2524_v30 }
 0xbf9   :  { %v4088_v16 = vpop.eup %4087 }
 0xbfa   :  { %2821 = vmatprep.mubr.bf16.mxu0 %v2653_v15  ;;  %v2651_v20 = vmul.f32 %v4088_v16, %v2646_v19 }
 0xbfc   :  { %v2652_v21 = vpack.c.bf16 %v2651_v20, %v2651_v20 }
 0xbfe   :  { %2822 = vmatmul.mubr.bf16.vlgmr.msra.gmra.mxu0 %v2652_v21 }
 0xcbe   :  { %v3515_v57 = vpop.f32.mrf.mxu0 }
 0xcc0   :  { %v3516_v23 = vpop.f32.mrf.mxu0 }
 0xcc1   :  { %v3517_v2 = vadd.f32 %v3516_v23, %v3515_v57 }
 0xcc2   :  { %v3518_v24 = vpop.f32.mrf.mxu0 }
 0xcc3   :  { %v2824_v26 = vadd.f32 %v3517_v2, %v4501_v53 }
 0xcc4   :  { %v3519_v29 = vpop.f32.mrf.mxu0 }
 0xcc5   :  { %v3251_v17 = vmul.f32 -1.442695, %v2824_v26  ;;  %4089 = vtanh.f32 %v2824_v26 }
 0xcc7   :  { %4091 = vpow2.f32 %v3251_v17 }
 0xcd2   :  { %v4090_v5 = vpop.eup %4089 }
 0xcd3   :  { %2838 = vrot.lane.b32.xlu0 %v4090_v5, %s4228_s10  ;;  %s3009_s10 = sshll.u32 %s4239_s7, 4  ;;  %s3010_s10 = int_to_ptr.vmem [resolvable:$true] %s3009_s10 }
 0xcd4   :  { %v4092_v31 = vpop.eup %4091  ;;  %s4198_s16 = scalar_lea.vmem %s3010_s10, 1024  ;;  %p4203_p12 = scmp.lt.s32.totalorder %s3010_s10, %s3010_s10 }
 0xcd5   :  { %v2832_v39 = vadd.f32 1.0, %v4092_v31  ;;  %p4199_p11 = scmp.ne.s32.totalorder %s3010_s10, %s4198_s16  ;;  %p4204_p13 = scmp.lt.s32.totalorder %s4198_s16, %s4198_s16 }
 0xcd7   :  { %4093 = vrcp.f32 %v2832_v39  ;;  %p4205_p0 = por %p4204_p13, %p4203_p12 }
 0xcd9   :  { %p4206_p1 = pnand %p4205_p0, %p4199_p11 }
 0xce4   :  { %v4094_v45 = vpop.eup %4093 }
 0xce5   :  { %2836 = vrot.lane.b32.xlu1 %v4094_v45, %s4237_s30 }
 0xce9   :  { %2840 = vrot.lane.b32.xlu1 %v4094_v45, %s4236_s29 }
 0xd45   :  { %v2839_v55 = vpop.permute.xlu0 %2838 }
 0xd46   :  { %v2843_v11 = vmul.f32 %v4094_v45, %v2839_v55 }
 0xd57   :  { %v2837_v32 = vpop.permute.xlu1 %2836 }
 0xd58   :  { %v2842_v36 = vmul.f32 %v2837_v32, %v2522_v4 }
 0xd5a   :  { %v2844_v53 = vadd.f32 %v2843_v11, %v2842_v36 }
 0xd5b   :  { %v2841_v14 = vpop.permute.xlu1 %2840 }
 0xd5c   :  { %4095 = vtanh.f32 %v2844_v53 }
 0xd69   :  { %v4096_v34 = vpop.eup %4095 }
 0xd6a   :  { %v2846_v35 = vmul.f32 %v4096_v34, %v2841_v14 }
 0xd6c   :  { %v2859_v37 = vpack.c.bf16 %v2846_v35, %v2524_v30 }
 0xd6e   :  { %3738 = vmatmul.mubr.bf16.gmra.mxu1 %v2859_v37 }
 0xe2e   :  { %v3739_v38 = vpop.f32.mrf.mxu1 }
 0xe2f   :  { %v2990_v22 = vadd.f32 %v3739_v38, %v4569_v43 }
 0xe30   :  { %v2981_v40 = vpop.f32.mrf.mxu1 }
 0xe31   :  { %3002 = vst [vmem:[#allocation13 + $0x30] sm:$0xff] %v2990_v22  ;;  %v2982_v41 = vadd.f32 %v4569_v43, %v2981_v40 }
 0xe32   :  { %v3740_v42 = vpop.f32.mrf.mxu1 }
 0xe33   :  { %3000 = vst [vmem:[#allocation13 + $0x20] sm:$0xff] %v2982_v41  ;;  %v2993_v44 = vadd.f32 %v3740_v42, %v4569_v43 }
 0xe34   :  { %v2984_v33 = vpop.f32.mrf.mxu1 }
 0xe35   :  { %3003 = vst [vmem:[#allocation13 + $0x38] sm:$0xff] %v2993_v44  ;;  %v2985_v46 = vadd.f32 %v4569_v43, %v2984_v33 }
 0xe37   :  { %3001 = vst [vmem:[#allocation13 + $0x28] sm:$0xff] %v2985_v46 }
 0xe38   :  { %4209 = shalt.err (!%p4206_p1)
}
 0xe39   :  { %s4240_s17 = smov 128   ;;  %s4241_s18 = smov 8  }
 0xe3a   :  { %3015 = dma.vmem_to_hbm [thread:$0]  %s3010_s10, 1024, %s4600_s8, [#allocation6], %s4240_s17, %s4240_s17, %s4241_s18  }
 0xe3b   :  { %4224 = dma.done.wait [#allocation6], 1024  }
 0xe3c   :  { %4225 = vsyncadd [#allocation6], 4294966272 }
 0xe3d   :  { %3019 = vsyncpa [#allocation5], 1 }
 0xe3e   :  { %3020 = vsyncpa [#allocation8], 1 }
 0xe3f   :  { %3021 = vsyncpa [#allocation11], 1 }
 0xe40   :  { %3022 = vsyncpa [#allocation6], 1 }

</bundles_post_ra>
